<compile_context>
chip_gen: v6e
topology: v6e:2x2x1
jax: 0.10.0
libtpu: 0.0.40
codegen_flags: <defaults>
</compile_context>

<pallas_src>
import functools

import jax
import jax.numpy as jnp
from jax import lax
from jax.experimental import pallas as pl
from jax.experimental.pallas import tpu as pltpu


# ----------------------------- small helpers ------------------------------- #

def _pick_tile(dim, target, align):
    """Largest t <= target with dim % t == 0 and t % align == 0, else dim."""
    if dim <= target:
        return dim
    t = (target // align) * align
    while t >= align:
        if dim % t == 0:
            return t
        t -= align
    return dim


def _vmem_capacity_bytes():
    """Physical VMEM per core; conservative (v7x) fallback if unavailable."""
    try:
        info = pltpu.get_tpu_info()
        for attr in ("vmem_capacity_bytes", "vmem_bytes", "vmem_size_bytes"):
            v = getattr(info, attr, None)
            if v:
                return int(v)
    except Exception:
        pass
    return 64 * 1024 * 1024


def _shift_flat(t, col, dy, dx, img_w):
    """Shift a row-major-flattened [..., H*W] image by (dy, dx), zero filled.

    result[..., y*W + x] = t[..., (y-dy)*W + (x-dx)]   (0 where out of range)
    `col` is int32 [1, H*W] holding x = n % W (precomputed in the wrapper so
    the kernel needs no iota/mod).  dy, dx are static Python ints.
    """
    n = t.shape[-1]
    s = dy * img_w + dx
    if s > 0:
        z = jnp.zeros(t.shape[:-1] + (s,), t.dtype)
        t = jnp.concatenate([z, t[..., : n - s]], axis=-1)
    elif s < 0:
        z = jnp.zeros(t.shape[:-1] + (-s,), t.dtype)
        t = jnp.concatenate([t[..., -s:], z], axis=-1)
    # Kill lanes that wrapped across the image-row (W) boundary.
    if dx > 0:
        t = jnp.where(col >= dx, t, jnp.zeros_like(t))
    elif dx < 0:
        t = jnp.where(col < img_w + dx, t, jnp.zeros_like(t))
    return t


# ---------------- Pallas kernel 1: 1x1 conv as matmul + bias ---------------- #
# out[b, o, n] = sum_k w[o, k] * x[b, k, n] + bias[o]; spatial N on lanes.

def _matmul_bias_1k_kernel(w_ref, b_ref, x_ref, o_ref):
    # Single K step: no accumulator round-trip, bias added at the store.
    acc = jnp.dot(w_ref[...], x_ref[0].astype(w_ref.dtype),
                  preferred_element_type=jnp.float32)
    o_ref[0] = (acc + b_ref[...]).astype(o_ref.dtype)


def _matmul_bias_kernel(w_ref, b_ref, x_ref, o_ref, acc_ref):
    @pl.when(pl.program_id(2) == 0)
    def _():
        acc_ref[...] = jnp.zeros_like(acc_ref)

    acc_ref[...] += jnp.dot(w_ref[...], x_ref[0].astype(w_ref.dtype),
                            preferred_element_type=jnp.float32)

    @pl.when(pl.program_id(2) == pl.num_programs(2) - 1)
    def _():
        o_ref[0] = (acc_ref[...] + b_ref[...]).astype(o_ref.dtype)


def conv1x1(x, w, b, *, out_dtype, tn_target, tk_target=512, vmem_limit):
    """x: [B, K, N] (any float dtype), w: [CO, K] (bf16), b: [CO] -> [B, CO, N]."""
    B, K, N = x.shape
    CO = w.shape[0]
    tn = _pick_tile(N, tn_target, 128)
    tk = _pick_tile(K, tk_target, 128)
    nk = K // tk
    bias = b.astype(jnp.float32).reshape(CO, 1)
    cost = pl.CostEstimate(
        flops=int(2 * B * CO * K * N),
        transcendentals=0,
        bytes_accessed=int(B * K * N * x.dtype.itemsize
                           + B * CO * N * jnp.dtype(out_dtype).itemsize
                           + CO * K * w.dtype.itemsize + CO * 4))
    if nk == 1:
        # NOTE: M = CO underfills the MXU for small C; this stage is HBM-bound
        # so it is hidden (pack B into M if bf16 ever makes it MXU-bound).
        return pl.pallas_call(
            _matmul_bias_1k_kernel,
            out_shape=jax.ShapeDtypeStruct((B, CO, N), out_dtype),
            grid=(B, N // tn),
            in_specs=[pl.BlockSpec((CO, K), lambda bb, j: (0, 0)),
                      pl.BlockSpec((CO, 1), lambda bb, j: (0, 0)),
                      pl.BlockSpec((1, K, tn), lambda bb, j: (bb, 0, j))],
            out_specs=pl.BlockSpec((1, CO, tn), lambda bb, j: (bb, 0, j)),
            compiler_params=pltpu.CompilerParams(
                dimension_semantics=("parallel", "parallel"),
                vmem_limit_bytes=vmem_limit),
            cost_estimate=cost,
        )(w, bias, x)
    return pl.pallas_call(
        _matmul_bias_kernel,
        out_shape=jax.ShapeDtypeStruct((B, CO, N), out_dtype),
        grid=(B, N // tn, nk),
        in_specs=[pl.BlockSpec((CO, tk), lambda bb, j, kk: (0, kk)),
                  pl.BlockSpec((CO, 1), lambda bb, j, kk: (0, 0)),
                  pl.BlockSpec((1, tk, tn), lambda bb, j, kk: (bb, kk, j))],
        out_specs=pl.BlockSpec((1, CO, tn), lambda bb, j, kk: (bb, 0, j)),
        scratch_shapes=[pltpu.VMEM((CO, tn), jnp.float32)],
        compiler_params=pltpu.CompilerParams(
            dimension_semantics=("parallel", "parallel", "arbitrary"),
            vmem_limit_bytes=vmem_limit),
        cost_estimate=cost,
    )(w, bias, x)


# ---------- Pallas kernels 2/3: ReLU linear attention, N streamed ----------- #
# Layout [G, D, tn]: G (batch, head) pairs per grid step, spatial tile tn on
# lanes.  Pass 1 accumulates kv = relu(k) v^T and ksum = sum_n relu(k) over N
# tiles; pass 2 re-streams N tiles and emits
#     out = (kv^T relu(q)) / (ksum . relu(q) + eps).

def _attn_kv_kernel(k_ref, v_ref, kv_ref, ks_ref):
    @pl.when(pl.program_id(1) == 0)
    def _():
        kv_ref[...] = jnp.zeros_like(kv_ref)
        ks_ref[...] = jnp.zeros_like(ks_ref)
    k = jnp.maximum(k_ref[...], 0)                       # ReLU feature map
    kv_ref[...] += jnp.einsum("gdn,gen->gde", k, v_ref[...],
                              preferred_element_type=jnp.float32)
    ks_ref[...] += jnp.sum(k.astype(jnp.float32), axis=-1)[:, None, :]


def _attn_out_kernel(q_ref, kv_ref, ks_ref, o_ref, *, approx_recip, eps):
    q = jnp.maximum(q_ref[...], 0)                       # [G, D, tn]
    kv = kv_ref[...].astype(q.dtype)                     # [G, D, D]
    ks = ks_ref[...].astype(q.dtype)                     # [G, 1, D]
    num = jnp.einsum("gde,gdn->gen", kv, q, preferred_element_type=jnp.float32)
    den = jnp.einsum("gud,gdn->gun", ks, q, preferred_element_type=jnp.float32)
    if approx_recip:
        inv = pl.reciprocal(den + eps, approx=True)      # EUP slot, ~free
    else:
        inv = 1.0 / (den + eps)
    o_ref[...] = (num * inv).astype(o_ref.dtype)


def _choose_attn_tiling(BH, D, N, itemsize, budget_bytes, tn_target):
    tn = _pick_tile(N, tn_target, 128)
    # Per-(batch, head) VMEM per grid step: q/out (or k/v) blocks double
    # buffered, the in-kernel relu copy, f32 num/den temporaries, and the
    # resident kv/ksum blocks (+ their in-kernel bf16 casts).
    per_g = (4 * D * tn * itemsize
             + D * tn * itemsize
             + (D + 1) * tn * 4
             + (D + 1) * D * 12)
    g_cap = int(max(1, min(BH, budget_bytes // max(per_g, 1))))
    G = 1
    for cand in range(min(g_cap, BH), 0, -1):
        if BH % cand == 0:
            G = cand
            break
    return G, tn


def linear_attention(q, k, v, *, budget_bytes, vmem_limit, tn_target,
                     approx_recip=True, eps=1e-6):
    """q, k, v: [BH, D, N] -> [BH, D, N] (dtype of q)."""
    BH, D, N = q.shape
    G, tn = _choose_attn_tiling(BH, D, N, q.dtype.itemsize, budget_bytes,
                                tn_target)
    grid = (BH // G, N // tn)
    io_bytes = int(3 * BH * D * N * q.dtype.itemsize + BH * D * (D + 1) * 4)

    kv, ks = pl.pallas_call(
        _attn_kv_kernel,
        out_shape=(jax.ShapeDtypeStruct((BH, D, D), jnp.float32),
                   jax.ShapeDtypeStruct((BH, 1, D), jnp.float32)),
        grid=grid,
        in_specs=[pl.BlockSpec((G, D, tn), lambda i, j: (i, 0, j)),
                  pl.BlockSpec((G, D, tn), lambda i, j: (i, 0, j))],
        out_specs=(pl.BlockSpec((G, D, D), lambda i, j: (i, 0, 0)),
                   pl.BlockSpec((G, 1, D), lambda i, j: (i, 0, 0))),
        compiler_params=pltpu.CompilerParams(
            dimension_semantics=("parallel", "arbitrary"),
            vmem_limit_bytes=vmem_limit),
        cost_estimate=pl.CostEstimate(flops=int(2 * BH * D * (D + 1) * N),
                                      transcendentals=0,
                                      bytes_accessed=io_bytes),
    )(k, v)

    return pl.pallas_call(
        functools.partial(_attn_out_kernel, approx_recip=approx_recip, eps=eps),
        out_shape=jax.ShapeDtypeStruct((BH, D, N), q.dtype),
        grid=grid,
        in_specs=[pl.BlockSpec((G, D, tn), lambda i, j: (i, 0, j)),
                  pl.BlockSpec((G, D, D), lambda i, j: (i, 0, 0)),
                  pl.BlockSpec((G, 1, D), lambda i, j: (i, 0, 0))],
        out_specs=pl.BlockSpec((G, D, tn), lambda i, j: (i, 0, j)),
        compiler_params=pltpu.CompilerParams(
            dimension_semantics=("parallel", "parallel"),
            vmem_limit_bytes=vmem_limit),
        cost_estimate=pl.CostEstimate(flops=int(2 * BH * D * (D + 1) * N),
                                      transcendentals=int(BH * N),
                                      bytes_accessed=io_bytes),
    )(q, kv, ks)


# --------- Pallas kernel 4: fold (col2im) + normalise + 3x3 proj conv ------- #

def _fold_norm_proj_kernel(cols_ref, inv_ref, col_ref, w_ref, b_ref, o_ref, *,
                           fold_p, fold_pad, img_w, compute_dtype):
    col = col_ref[...]                                   # [1, N] int32, x = n % W
    C = cols_ref.shape[1]
    N = cols_ref.shape[3]
    CO = o_ref.shape[1]
    # ---- col2im (fold) + analytic overlap normalisation, all in VMEM ----
    folded = jnp.zeros((C, N), jnp.float32)
    for i in range(fold_p):
        for j in range(fold_p):
            tap = cols_ref[0, :, i * fold_p + j, :].astype(jnp.float32)
            folded = folded + _shift_flat(tap, col, i - fold_pad, j - fold_pad,
                                          img_w)
    xin = (folded * inv_ref[...]).astype(compute_dtype)  # [C, N]
    # ---- 3x3 proj conv: im2col fused in VMEM as 9 shifted MXU matmuls ----
    acc = jnp.zeros((CO, N), jnp.float32)
    for ci in range(3):
        for cj in range(3):
            xs = _shift_flat(xin, col, 1 - ci, 1 - cj, img_w)
            acc = acc + jnp.dot(w_ref[ci * 3 + cj], xs,
                                preferred_element_type=jnp.float32)
    o_ref[0] = (acc + b_ref[...]).astype(o_ref.dtype)


def fold_norm_proj(cols, inv_n, col_idx, w_tap, bias, *, img_w, fold_p,
                   fold_pad, out_dtype, compute_dtype, vmem_limit):
    """cols: [B, C, P*P, N] -> fold + normalise + 3x3 conv + bias -> [B, CO, N]."""
    B, C, PP, N = cols.shape
    CO = w_tap.shape[1]
    kern = functools.partial(_fold_norm_proj_kernel, fold_p=fold_p,
                             fold_pad=fold_pad, img_w=img_w,
                             compute_dtype=compute_dtype)
    cost = pl.CostEstimate(
        flops=int(2 * B * CO * C * 9 * N + 2 * B * C * PP * N),
        transcendentals=0,
        bytes_accessed=int(B * C * PP * N * cols.dtype.itemsize
                           + B * CO * N * jnp.dtype(out_dtype).itemsize))
    return pl.pallas_call(
        kern,
        out_shape=jax.ShapeDtypeStruct((B, CO, N), out_dtype),
        grid=(B,),
        in_specs=[pl.BlockSpec((1, C, PP, N), lambda b: (b, 0, 0, 0)),
                  pl.BlockSpec((1, N), lambda b: (0, 0)),
                  pl.BlockSpec((1, N), lambda b: (0, 0)),
                  pl.BlockSpec((9, CO, C), lambda b: (0, 0, 0)),
                  pl.BlockSpec((CO, 1), lambda b: (0, 0))],
        out_specs=pl.BlockSpec((1, CO, N), lambda b: (b, 0, 0)),
        compiler_params=pltpu.CompilerParams(
            dimension_semantics=("parallel",),
            vmem_limit_bytes=vmem_limit),
        cost_estimate=cost,
    )(cols, inv_n, col_idx, w_tap, bias.astype(jnp.float32).reshape(CO, 1))


# ------------------------------- XLA glue ----------------------------------- #

def unfold(x, P, pad):
    """torch.nn.functional.unfold: [B, C, H, W] -> [B, C*P*P, H*W].
    Feature ordering matches torch (c*P*P + i*P + j)."""
    B, C, H, W = x.shape
    patches = lax.conv_general_dilated_patches(
        x, filter_shape=(P, P), window_strides=(1, 1),
        padding=((pad, pad), (pad, pad)))
    return patches.reshape(B, C * P * P, H * W)


def _fold_xla(cols, H, W, P, pad):
    """Fallback col2im (scatter-add) for shapes whose per-image block does not
    fit in VMEM for the fused Pallas fold+proj kernel."""
    B, C, _, _ = cols.shape
    cols = cols.reshape(B, C, P, P, H, W)
    out = jnp.zeros((B, C, H + 2 * pad, W + 2 * pad), jnp.float32)
    for i in range(P):
        for j in range(P):
            out = out.at[:, :, i:i + H, j:j + W].add(
                cols[:, :, i, j].astype(jnp.float32))
    return out[:, :, pad:pad + H, pad:pad + W]


def _fold_overlap_count(H, W, P, pad):
    """fold(unfold(ones)): depends only on position -> tiny [H, W] map."""
    def counts(L):
        h = jnp.arange(L)[:, None]
        i = jnp.arange(P)[None, :]
        t = h + pad - i
        return jnp.sum(((t >= 0) & (t < L)).astype(jnp.float32), axis=1)
    return counts(H)[:, None] * counts(W)[None, :]


# ----------------------------- forward pass --------------------------------- #

def conv_multihead_attention(x, params, num_heads, patch_size, *,
                             compute_dtype=jnp.bfloat16, approx_recip=True):
    """Forward pass of convMultiheadAttetion. x: [B, C, H, W] (NCHW)."""
    B, C, H, W = x.shape
    out_dtype = x.dtype
    pad = (patch_size - 1) // 2
    N = H * W
    PP = patch_size * patch_size
    assert (C * PP) % num_heads == 0
    D = (C * PP) // num_heads
    cdt = jnp.dtype(compute_dtype)

    # Generation-aware knobs (v5e/v6e: 128 MiB VMEM, v7x: 64 MiB).
    vmem = _vmem_capacity_bytes()
    big_vmem = vmem >= 100 * 1024 * 1024
    vmem_limit = min(int(vmem * 3 // 4), 96 * 1024 * 1024)
    attn_budget = vmem // 4
    conv_tn_target = 2048 if big_vmem else 1024
    attn_tn_target = 1024 if big_vmem else 512

    # 1) qkv 1x1 conv as a channels-major Pallas matmul (spatial N on lanes);
    #    x is read from HBM once and cast to bf16 in VMEM.
    w_qkv = params["w_qkv"].reshape(3 * C, C).astype(cdt)
    qkv = conv1x1(x.reshape(B, C, N), w_qkv, params["b_qkv"],
                  out_dtype=cdt, tn_target=conv_tn_target,
                  vmem_limit=vmem_limit)                      # [B, 3C, N] bf16
    qkv = qkv.reshape(B, 3, C, H, W)
    q, k, v = qkv[:, 0], qkv[:, 1], qkv[:, 2]

    # 2/3) unfold (im2col).  ReLU on q/k happens inside the attention kernel:
    #      valid because unfold only copies / zero-pads and relu(0) == 0.
    qh = unfold(q, patch_size, pad).reshape(B * num_heads, D, N)
    kh = unfold(k, patch_size, pad).reshape(B * num_heads, D, N)
    vh = unfold(v, patch_size, pad).reshape(B * num_heads, D, N)

    # 4) ReLU linear attention (two Pallas passes streaming N); denominator is
    #    built in-kernel, so there is no v-augmentation copy in HBM.
    oh = linear_attention(qh, kh, vh, budget_bytes=attn_budget,
                          vmem_limit=vmem_limit, tn_target=attn_tn_target,
                          approx_recip=approx_recip)          # [BH, D, N] bf16

    # 5/6) fold (col2im) + overlap normalisation + 3x3 proj conv, fused.
    cols = oh.reshape(B, C, PP, N)                # pure reshape (head-major)
    inv_n = (1.0 / _fold_overlap_count(H, W, patch_size, pad)).reshape(1, N)
    w_proj = params["w_proj"]                     # [C, C, 3, 3]
    pp_pad = -(-PP // 16) * 16                    # bf16 sublane padding of P*P
    fused_bytes = (2 * C * pp_pad * N * cdt.itemsize
                   + (C + 2 * w_proj.shape[0]) * N * 4)
    if fused_bytes <= attn_budget:
        w_tap = jnp.transpose(w_proj, (2, 3, 0, 1)).reshape(9, C, C).astype(cdt)
        col_idx = (jnp.arange(N, dtype=jnp.int32) % W).reshape(1, N)
        out = fold_norm_proj(cols, inv_n, col_idx, w_tap, params["b_proj"],
                             img_w=W, fold_p=patch_size, fold_pad=pad,
                             out_dtype=out_dtype, compute_dtype=cdt,
                             vmem_limit=vmem_limit)           # [B, C, N]
    else:
        # TODO(synk): spatially tile the fused fold+proj kernel (needs a W-halo
        # across N tiles); until then fall back to XLA fold + im2col + matmul.
        xf = _fold_xla(cols, H, W, patch_size, pad)
        xf = xf * (1.0 / _fold_overlap_count(H, W, patch_size, pad))[None, None]
        xcols = unfold(xf.astype(cdt), 3, 1)                  # [B, C*9, N]
        out = conv1x1(xcols, w_proj.reshape(C, C * 9).astype(cdt),
                      params["b_proj"], out_dtype=out_dtype,
                      tn_target=conv_tn_target, vmem_limit=vmem_limit)
    return out.reshape(B, C, H, W)


# --------------------------------- main ------------------------------------- #

if __name__ == "__main__":
    B, C, H, W = 2, 4, 16, 16
    num_heads, patch_size = 2, 3

    key = jax.random.PRNGKey(0)
    kx, kp = jax.random.split(key)
    x = jax.random.normal(kx, (B, C, H, W), jnp.float32)

    # Parameter shapes match the torch module's __init__:
    #   qkv:  Conv2d(C, 3C, 1) -> weight [3C, C, 1, 1], bias [3C]
    #   proj: Conv2d(C, C, 3)  -> weight [C, C, 3, 3],  bias [C]
    k1, k2, k3, k4 = jax.random.split(kp, 4)
    params = {
        "w_qkv": 0.1 * jax.random.normal(k1, (3 * C, C, 1, 1), jnp.float32),
        "b_qkv": 0.1 * jax.random.normal(k2, (3 * C,), jnp.float32),
        "w_proj": 0.1 * jax.random.normal(k3, (C, C, 3, 3), jnp.float32),
        "b_proj": 0.1 * jax.random.normal(k4, (C,), jnp.float32),
    }

    fwd = jax.jit(
        lambda xx: conv_multihead_attention(xx, params, num_heads, patch_size))
    out = fwd(x)
    jax.block_until_ready(out)
    assert out.shape == (B, C, H, W) and out.dtype == jnp.float32
    assert bool(jnp.all(jnp.isfinite(out)))
    print("KERNEL_OK")
</pallas_src>

<mosaic_0001>
module attributes {stable_mosaic.version = 11 : i64} {
  func.func @_matmul_bias_1k_kernel(%arg0: i32, %arg1: i32, %arg2: memref<12x4xbf16, #tpu.memory_space<vmem>>, %arg3: memref<12x1xf32, #tpu.memory_space<vmem>>, %arg4: memref<1x4x256xf32, #tpu.memory_space<vmem>>, %arg5: memref<1x12x256xbf16, #tpu.memory_space<vmem>>) attributes {dimension_semantics = [#tpu.dimension_semantics<parallel>, #tpu.dimension_semantics<parallel>], iteration_bounds = array<i64: 2, 1>, scalar_prefetch = 0 : i64, scratch_operands = 0 : i64, tpu.core_type = #tpu.core_type<tc>, window_params = [{pipeline_mode = #tpu.pipeline_mode<synchronous>, transform_indices = @transform_0, window_bounds = array<i64: 12, 4>}, {pipeline_mode = #tpu.pipeline_mode<synchronous>, transform_indices = @transform_1, window_bounds = array<i64: 12, 1>}, {transform_indices = @transform_2, window_bounds = array<i64: 1, 4, 256>}, {transform_indices = @transform_3, window_bounds = array<i64: 1, 12, 256>}]} {
    %c0 = arith.constant 0 : index
    %c0_0 = arith.constant 0 : index
    %0 = vector.load %arg2[%c0, %c0_0] : memref<12x4xbf16, #tpu.memory_space<vmem>>, vector<12x4xbf16>
    %c0_1 = arith.constant 0 : index
    %c0_2 = arith.constant 0 : index
    %c0_3 = arith.constant 0 : index
    %1 = vector.load %arg4[%c0_1, %c0_2, %c0_3] : memref<1x4x256xf32, #tpu.memory_space<vmem>>, vector<1x4x256xf32>
    %2 = vector.shape_cast %1 : vector<1x4x256xf32> to vector<4x256xf32>
    %3 = arith.truncf %2 : vector<4x256xf32> to vector<4x256xbf16>
    %cst = arith.constant dense<0.000000e+00> : vector<12x256xf32>
    %4 = tpu.matmul %0, %3, %cst {dimension_numbers = #tpu.dot_dimension_numbers<[1], [0], [0], [1], [0, 0, 1, 1], [], []>} : vector<12x4xbf16>, vector<4x256xbf16>, vector<12x256xf32> -> vector<12x256xf32>
    %c0_4 = arith.constant 0 : index
    %c0_5 = arith.constant 0 : index
    %5 = vector.load %arg3[%c0_4, %c0_5] : memref<12x1xf32, #tpu.memory_space<vmem>>, vector<12x1xf32>
    %6 = vector.broadcast %5 : vector<12x1xf32> to vector<12x256xf32>
    %7 = arith.addf %4, %6 : vector<12x256xf32>
    %8 = arith.truncf %7 : vector<12x256xf32> to vector<12x256xbf16>
    %c0_6 = arith.constant 0 : index
    %c0_7 = arith.constant 0 : index
    %c0_8 = arith.constant 0 : index
    %9 = vector.load %arg5[%c0_6, %c0_7, %c0_8] : memref<1x12x256xbf16, #tpu.memory_space<vmem>>, vector<1x12x256xbf16>
    %10 = vector.shape_cast %9 : vector<1x12x256xbf16> to vector<12x256xbf16>
    %11 = vector.shape_cast %8 : vector<12x256xbf16> to vector<1x12x256xbf16>
    tpu.vector_store %arg5[%c0_6, %c0_7, %c0_8], %11 {strides = array<i32>} : memref<1x12x256xbf16, #tpu.memory_space<vmem>>, vector<1x12x256xbf16>,
    return
  }
  func.func @transform_0(%arg0: i32, %arg1: i32) -> (i32, i32) {
    %c0_i32 = arith.constant 0 : i32
    %c0_i32_0 = arith.constant 0 : i32
    %c0_i32_1 = arith.constant 0 : i32
    return %c0_i32, %c0_i32_0 : i32, i32
  }
  func.func @transform_1(%arg0: i32, %arg1: i32) -> (i32, i32) {
    %c0_i32 = arith.constant 0 : i32
    %c0_i32_0 = arith.constant 0 : i32
    %c0_i32_1 = arith.constant 0 : i32
    return %c0_i32, %c0_i32_0 : i32, i32
  }
  func.func @transform_2(%arg0: i32, %arg1: i32) -> (i32, i32, i32) {
    %c0_i32 = arith.constant 0 : i32
    %c0_i32_0 = arith.constant 0 : i32
    return %arg0, %c0_i32, %arg1 : i32, i32, i32
  }
  func.func @transform_3(%arg0: i32, %arg1: i32) -> (i32, i32, i32) {
    %c0_i32 = arith.constant 0 : i32
    %c0_i32_0 = arith.constant 0 : i32
    return %arg0, %c0_i32, %arg1 : i32, i32, i32
  }
}

module attributes {stable_mosaic.version = 11 : i64} {
  func.func @_attn_kv_kernel(%arg0: i32, %arg1: i32, %arg2: memref<4x18x256xbf16, #tpu.memory_space<vmem>>, %arg3: memref<4x18x256xbf16, #tpu.memory_space<vmem>>, %arg4: memref<4x18x18xf32, #tpu.memory_space<vmem>>, %arg5: memref<4x1x18xf32, #tpu.memory_space<vmem>>) attributes {dimension_semantics = [#tpu.dimension_semantics<parallel>, #tpu.dimension_semantics<arbitrary>], iteration_bounds = array<i64: 1, 1>, scalar_prefetch = 0 : i64, scratch_operands = 0 : i64, tpu.core_type = #tpu.core_type<tc>, window_params = [{transform_indices = @transform_0, window_bounds = array<i64: 4, 18, 256>}, {transform_indices = @transform_1, window_bounds = array<i64: 4, 18, 256>}, {transform_indices = @transform_2, window_bounds = array<i64: 4, 18, 18>}, {transform_indices = @transform_3, window_bounds = array<i64: 4, 1, 18>}]} {
    %c0_i32 = arith.constant 0 : i32
    %0 = arith.cmpi eq, %arg1, %c0_i32 : i32
    %1 = arith.extui %0 : i1 to i32
    %c0_i32_0 = arith.constant 0 : i32
    %2 = arith.cmpi ne, %1, %c0_i32_0 : i32
    scf.if %2 {
      %cst_20 = arith.constant 0.000000e+00 : f32
      %17 = vector.broadcast %cst_20 : f32 to vector<4x18x18xf32>
      %c0_21 = arith.constant 0 : index
      %c0_22 = arith.constant 0 : index
      %c0_23 = arith.constant 0 : index
      %18 = vector.load %arg4[%c0_21, %c0_22, %c0_23] : memref<4x18x18xf32, #tpu.memory_space<vmem>>, vector<4x18x18xf32>
      tpu.vector_store %arg4[%c0_21, %c0_22, %c0_23], %17 {strides = array<i32>} : memref<4x18x18xf32, #tpu.memory_space<vmem>>, vector<4x18x18xf32>,
      %cst_24 = arith.constant 0.000000e+00 : f32
      %19 = vector.broadcast %cst_24 : f32 to vector<4x1x18xf32>
      %c0_25 = arith.constant 0 : index
      %c0_26 = arith.constant 0 : index
      %c0_27 = arith.constant 0 : index
      %20 = vector.load %arg5[%c0_25, %c0_26, %c0_27] : memref<4x1x18xf32, #tpu.memory_space<vmem>>, vector<4x1x18xf32>
      tpu.vector_store %arg5[%c0_25, %c0_26, %c0_27], %19 {strides = array<i32>} : memref<4x1x18xf32, #tpu.memory_space<vmem>>, vector<4x1x18xf32>,
    } else {
    }
    %c0 = arith.constant 0 : index
    %c0_1 = arith.constant 0 : index
    %c0_2 = arith.constant 0 : index
    %3 = vector.load %arg2[%c0, %c0_1, %c0_2] : memref<4x18x256xbf16, #tpu.memory_space<vmem>>, vector<4x18x256xbf16>
    %cst = arith.constant 0.000000e+00 : bf16
    %4 = vector.broadcast %cst : bf16 to vector<4x18x256xbf16>
    %5 = arith.maximumf %3, %4 : vector<4x18x256xbf16>
    %c0_3 = arith.constant 0 : index
    %c0_4 = arith.constant 0 : index
    %c0_5 = arith.constant 0 : index
    %6 = vector.load %arg4[%c0_3, %c0_4, %c0_5] : memref<4x18x18xf32, #tpu.memory_space<vmem>>, vector<4x18x18xf32>
    %c0_6 = arith.constant 0 : index
    %c0_7 = arith.constant 0 : index
    %c0_8 = arith.constant 0 : index
    %7 = vector.load %arg3[%c0_6, %c0_7, %c0_8] : memref<4x18x256xbf16, #tpu.memory_space<vmem>>, vector<4x18x256xbf16>
    "tpu.trace_start"() <{level = 10 : i32, message = "gdn,gen->gde"}> : () -> ()
    %cst_9 = arith.constant dense<0.000000e+00> : vector<4x18x18xf32>
    %8 = tpu.matmul %5, %7, %cst_9 {dimension_numbers = #tpu.dot_dimension_numbers<[2], [2], [1], [1], [0, 0, 0, 1, 1, 1], [0], [0]>} : vector<4x18x256xbf16>, vector<4x18x256xbf16>, vector<4x18x18xf32> -> vector<4x18x18xf32>
    "tpu.trace_stop"() : () -> ()
    %9 = arith.addf %6, %8 : vector<4x18x18xf32>
    %c0_10 = arith.constant 0 : index
    %c0_11 = arith.constant 0 : index
    %c0_12 = arith.constant 0 : index
    %10 = vector.load %arg4[%c0_10, %c0_11, %c0_12] : memref<4x18x18xf32, #tpu.memory_space<vmem>>, vector<4x18x18xf32>
    tpu.vector_store %arg4[%c0_10, %c0_11, %c0_12], %9 {strides = array<i32>} : memref<4x18x18xf32, #tpu.memory_space<vmem>>, vector<4x18x18xf32>,
    %c0_13 = arith.constant 0 : index
    %c0_14 = arith.constant 0 : index
    %c0_15 = arith.constant 0 : index
    %11 = vector.load %arg5[%c0_13, %c0_14, %c0_15] : memref<4x1x18xf32, #tpu.memory_space<vmem>>, vector<4x1x18xf32>
    %12 = arith.extf %5 : vector<4x18x256xbf16> to vector<4x18x256xf32>
    %cst_16 = arith.constant dense<0.000000e+00> : vector<4x18xf32>
    %13 = vector.multi_reduction <add>, %12, %cst_16 [2] : vector<4x18x256xf32> to vector<4x18xf32>
    %14 = vector.shape_cast %13 : vector<4x18xf32> to vector<4x1x18xf32>
    %15 = arith.addf %11, %14 : vector<4x1x18xf32>
    %c0_17 = arith.constant 0 : index
    %c0_18 = arith.constant 0 : index
    %c0_19 = arith.constant 0 : index
    %16 = vector.load %arg5[%c0_17, %c0_18, %c0_19] : memref<4x1x18xf32, #tpu.memory_space<vmem>>, vector<4x1x18xf32>
    tpu.vector_store %arg5[%c0_17, %c0_18, %c0_19], %15 {strides = array<i32>} : memref<4x1x18xf32, #tpu.memory_space<vmem>>, vector<4x1x18xf32>,
    return
  }
  func.func @transform_0(%arg0: i32, %arg1: i32) -> (i32, i32, i32) {
    %c0_i32 = arith.constant 0 : i32
    %c0_i32_0 = arith.constant 0 : i32
    return %arg0, %c0_i32, %arg1 : i32, i32, i32
  }
  func.func @transform_1(%arg0: i32, %arg1: i32) -> (i32, i32, i32) {
    %c0_i32 = arith.constant 0 : i32
    %c0_i32_0 = arith.constant 0 : i32
    return %arg0, %c0_i32, %arg1 : i32, i32, i32
  }
  func.func @transform_2(%arg0: i32, %arg1: i32) -> (i32, i32, i32) {
    %c0_i32 = arith.constant 0 : i32
    %c0_i32_0 = arith.constant 0 : i32
    %c0_i32_1 = arith.constant 0 : i32
    return %arg0, %c0_i32, %c0_i32_0 : i32, i32, i32
  }
  func.func @transform_3(%arg0: i32, %arg1: i32) -> (i32, i32, i32) {
    %c0_i32 = arith.constant 0 : i32
    %c0_i32_0 = arith.constant 0 : i32
    %c0_i32_1 = arith.constant 0 : i32
    return %arg0, %c0_i32, %c0_i32_0 : i32, i32, i32
  }
}

module attributes {stable_mosaic.version = 11 : i64} {
  func.func @_attn_out_kernel(%arg0: i32, %arg1: i32, %arg2: memref<4x18x256xbf16, #tpu.memory_space<vmem>>, %arg3: memref<4x18x18xf32, #tpu.memory_space<vmem>>, %arg4: memref<4x1x18xf32, #tpu.memory_space<vmem>>, %arg5: memref<4x18x256xbf16, #tpu.memory_space<vmem>>) attributes {dimension_semantics = [#tpu.dimension_semantics<parallel>, #tpu.dimension_semantics<parallel>], iteration_bounds = array<i64: 1, 1>, scalar_prefetch = 0 : i64, scratch_operands = 0 : i64, tpu.core_type = #tpu.core_type<tc>, window_params = [{transform_indices = @transform_0, window_bounds = array<i64: 4, 18, 256>}, {transform_indices = @transform_1, window_bounds = array<i64: 4, 18, 18>}, {transform_indices = @transform_2, window_bounds = array<i64: 4, 1, 18>}, {transform_indices = @transform_3, window_bounds = array<i64: 4, 18, 256>}]} {
    %c0 = arith.constant 0 : index
    %c0_0 = arith.constant 0 : index
    %c0_1 = arith.constant 0 : index
    %0 = vector.load %arg2[%c0, %c0_0, %c0_1] : memref<4x18x256xbf16, #tpu.memory_space<vmem>>, vector<4x18x256xbf16>
    %cst = arith.constant 0.000000e+00 : bf16
    %1 = vector.broadcast %cst : bf16 to vector<4x18x256xbf16>
    %2 = arith.maximumf %0, %1 : vector<4x18x256xbf16>
    %c0_2 = arith.constant 0 : index
    %c0_3 = arith.constant 0 : index
    %c0_4 = arith.constant 0 : index
    %3 = vector.load %arg3[%c0_2, %c0_3, %c0_4] : memref<4x18x18xf32, #tpu.memory_space<vmem>>, vector<4x18x18xf32>
    %4 = arith.truncf %3 : vector<4x18x18xf32> to vector<4x18x18xbf16>
    %c0_5 = arith.constant 0 : index
    %c0_6 = arith.constant 0 : index
    %c0_7 = arith.constant 0 : index
    %5 = vector.load %arg4[%c0_5, %c0_6, %c0_7] : memref<4x1x18xf32, #tpu.memory_space<vmem>>, vector<4x1x18xf32>
    %6 = arith.truncf %5 : vector<4x1x18xf32> to vector<4x1x18xbf16>
    "tpu.trace_start"() <{level = 10 : i32, message = "gde,gdn->gen"}> : () -> ()
    %cst_8 = arith.constant dense<0.000000e+00> : vector<4x18x256xf32>
    %7 = tpu.matmul %4, %2, %cst_8 {dimension_numbers = #tpu.dot_dimension_numbers<[1], [1], [2], [2], [0, 0, 0, 2, 1, 2], [0], [0]>} : vector<4x18x18xbf16>, vector<4x18x256xbf16>, vector<4x18x256xf32> -> vector<4x18x256xf32>
    "tpu.trace_stop"() : () -> ()
    "tpu.trace_start"() <{level = 10 : i32, message = "gud,gdn->gun"}> : () -> ()
    %cst_9 = arith.constant dense<0.000000e+00> : vector<4x1x256xf32>
    %8 = tpu.matmul %6, %2, %cst_9 {dimension_numbers = #tpu.dot_dimension_numbers<[2], [1], [1], [2], [0, 0, 0, 1, 1, 2], [0], [0]>} : vector<4x1x18xbf16>, vector<4x18x256xbf16>, vector<4x1x256xf32> -> vector<4x1x256xf32>
    "tpu.trace_stop"() : () -> ()
    %cst_10 = arith.constant 9.99999997E-7 : f32
    %9 = vector.broadcast %cst_10 : f32 to vector<4x1x256xf32>
    %10 = arith.addf %8, %9 : vector<4x1x256xf32>
    %11 = tpu.reciprocal %10 {approx = true} : vector<4x1x256xf32> -> vector<4x1x256xf32>
    %12 = vector.broadcast %11 : vector<4x1x256xf32> to vector<4x18x256xf32>
    %13 = arith.mulf %7, %12 : vector<4x18x256xf32>
    %14 = arith.truncf %13 : vector<4x18x256xf32> to vector<4x18x256xbf16>
    %c0_11 = arith.constant 0 : index
    %c0_12 = arith.constant 0 : index
    %c0_13 = arith.constant 0 : index
    %15 = vector.load %arg5[%c0_11, %c0_12, %c0_13] : memref<4x18x256xbf16, #tpu.memory_space<vmem>>, vector<4x18x256xbf16>
    tpu.vector_store %arg5[%c0_11, %c0_12, %c0_13], %14 {strides = array<i32>} : memref<4x18x256xbf16, #tpu.memory_space<vmem>>, vector<4x18x256xbf16>,
    return
  }
  func.func @transform_0(%arg0: i32, %arg1: i32) -> (i32, i32, i32) {
    %c0_i32 = arith.constant 0 : i32
    %c0_i32_0 = arith.constant 0 : i32
    return %arg0, %c0_i32, %arg1 : i32, i32, i32
  }
  func.func @transform_1(%arg0: i32, %arg1: i32) -> (i32, i32, i32) {
    %c0_i32 = arith.constant 0 : i32
    %c0_i32_0 = arith.constant 0 : i32
    %c0_i32_1 = arith.constant 0 : i32
    return %arg0, %c0_i32, %c0_i32_0 : i32, i32, i32
  }
  func.func @transform_2(%arg0: i32, %arg1: i32) -> (i32, i32, i32) {
    %c0_i32 = arith.constant 0 : i32
    %c0_i32_0 = arith.constant 0 : i32
    %c0_i32_1 = arith.constant 0 : i32
    return %arg0, %c0_i32, %c0_i32_0 : i32, i32, i32
  }
  func.func @transform_3(%arg0: i32, %arg1: i32) -> (i32, i32, i32) {
    %c0_i32 = arith.constant 0 : i32
    %c0_i32_0 = arith.constant 0 : i32
    return %arg0, %c0_i32, %arg1 : i32, i32, i32
  }
}

module attributes {stable_mosaic.version = 11 : i64} {
  func.func @_fold_norm_proj_kernel(%arg0: i32, %arg1: memref<1x4x9x256xbf16, #tpu.memory_space<vmem>>, %arg2: memref<1x256xf32, #tpu.memory_space<vmem>>, %arg3: memref<1x256xi32, #tpu.memory_space<vmem>>, %arg4: memref<9x4x4xbf16, #tpu.memory_space<vmem>>, %arg5: memref<4x1xf32, #tpu.memory_space<vmem>>, %arg6: memref<1x4x256xf32, #tpu.memory_space<vmem>>) attributes {dimension_semantics = [#tpu.dimension_semantics<parallel>], iteration_bounds = array<i64: 2>, scalar_prefetch = 0 : i64, scratch_operands = 0 : i64, tpu.core_type = #tpu.core_type<tc>, window_params = [{transform_indices = @transform_0, window_bounds = array<i64: 1, 4, 9, 256>}, {pipeline_mode = #tpu.pipeline_mode<synchronous>, transform_indices = @transform_1, window_bounds = array<i64: 1, 256>}, {pipeline_mode = #tpu.pipeline_mode<synchronous>, transform_indices = @transform_2, window_bounds = array<i64: 1, 256>}, {pipeline_mode = #tpu.pipeline_mode<synchronous>, transform_indices = @transform_3, window_bounds = array<i64: 9, 4, 4>}, {pipeline_mode = #tpu.pipeline_mode<synchronous>, transform_indices = @transform_4, window_bounds = array<i64: 4, 1>}, {transform_indices = @transform_5, window_bounds = array<i64: 1, 4, 256>}]} {
    %c0 = arith.constant 0 : index
    %c0_0 = arith.constant 0 : index
    %0 = vector.load %arg3[%c0, %c0_0] : memref<1x256xi32, #tpu.memory_space<vmem>>, vector<1x256xi32>
    %cst = arith.constant 0.000000e+00 : f32
    %1 = vector.broadcast %cst : f32 to vector<4x256xf32>
    %c0_1 = arith.constant 0 : index
    %c0_2 = arith.constant 0 : index
    %c0_3 = arith.constant 0 : index
    %c0_4 = arith.constant 0 : index
    %2 = vector.load %arg1[%c0_1, %c0_2, %c0_3, %c0_4] : memref<1x4x9x256xbf16, #tpu.memory_space<vmem>>, vector<1x4x1x256xbf16>
    %3 = vector.shape_cast %2 : vector<1x4x1x256xbf16> to vector<4x256xbf16>
    %4 = arith.extf %3 : vector<4x256xbf16> to vector<4x256xf32>
    %cst_5 = arith.constant 0.000000e+00 : f32
    %5 = vector.broadcast %cst_5 : f32 to vector<4x17xf32>
    %6 = vector.extract_strided_slice %4 {offsets = [0, 17], sizes = [4, 239], strides = [1, 1]} : vector<4x256xf32> to vector<4x239xf32>
    %7 = tpu.concatenate %6, %5 in 1 : vector<4x239xf32>, vector<4x17xf32> -> vector<4x256xf32>
    %c15_i32 = arith.constant 15 : i32
    %8 = vector.broadcast %c15_i32 : i32 to vector<1x256xi32>
    %9 = arith.cmpi slt, %0, %8 : vector<1x256xi32>
    %cst_6 = arith.constant 0.000000e+00 : f32
    %10 = vector.broadcast %cst_6 : f32 to vector<4x256xf32>
    %11 = vector.shape_cast %9 : vector<1x256xi1> to vector<1x256xi1>
    %12 = vector.broadcast %11 : vector<1x256xi1> to vector<4x256xi1>
    %13 = arith.select %12, %7, %10 : vector<4x256xi1>, vector<4x256xf32>
    %14 = arith.addf %1, %13 : vector<4x256xf32>
    %c0_7 = arith.constant 0 : index
    %c0_8 = arith.constant 0 : index
    %c1 = arith.constant 1 : index
    %c0_9 = arith.constant 0 : index
    %15 = vector.load %arg1[%c0_7, %c0_8, %c1, %c0_9] : memref<1x4x9x256xbf16, #tpu.memory_space<vmem>>, vector<1x4x1x256xbf16>
    %16 = vector.shape_cast %15 : vector<1x4x1x256xbf16> to vector<4x256xbf16>
    %17 = arith.extf %16 : vector<4x256xbf16> to vector<4x256xf32>
    %cst_10 = arith.constant 0.000000e+00 : f32
    %18 = vector.broadcast %cst_10 : f32 to vector<4x16xf32>
    %19 = vector.extract_strided_slice %17 {offsets = [0, 16], sizes = [4, 240], strides = [1, 1]} : vector<4x256xf32> to vector<4x240xf32>
    %20 = tpu.concatenate %19, %18 in 1 : vector<4x240xf32>, vector<4x16xf32> -> vector<4x256xf32>
    %21 = arith.addf %14, %20 : vector<4x256xf32>
    %c0_11 = arith.constant 0 : index
    %c0_12 = arith.constant 0 : index
    %c2 = arith.constant 2 : index
    %c0_13 = arith.constant 0 : index
    %22 = vector.load %arg1[%c0_11, %c0_12, %c2, %c0_13] : memref<1x4x9x256xbf16, #tpu.memory_space<vmem>>, vector<1x4x1x256xbf16>
    %23 = vector.shape_cast %22 : vector<1x4x1x256xbf16> to vector<4x256xbf16>
    %24 = arith.extf %23 : vector<4x256xbf16> to vector<4x256xf32>
    %cst_14 = arith.constant 0.000000e+00 : f32
    %25 = vector.broadcast %cst_14 : f32 to vector<4x15xf32>
    %26 = vector.extract_strided_slice %24 {offsets = [0, 15], sizes = [4, 241], strides = [1, 1]} : vector<4x256xf32> to vector<4x241xf32>
    %27 = tpu.concatenate %26, %25 in 1 : vector<4x241xf32>, vector<4x15xf32> -> vector<4x256xf32>
    %c1_i32 = arith.constant 1 : i32
    %28 = vector.broadcast %c1_i32 : i32 to vector<1x256xi32>
    %29 = arith.cmpi sge, %0, %28 : vector<1x256xi32>
    %cst_15 = arith.constant 0.000000e+00 : f32
    %30 = vector.broadcast %cst_15 : f32 to vector<4x256xf32>
    %31 = vector.shape_cast %29 : vector<1x256xi1> to vector<1x256xi1>
    %32 = vector.broadcast %31 : vector<1x256xi1> to vector<4x256xi1>
    %33 = arith.select %32, %27, %30 : vector<4x256xi1>, vector<4x256xf32>
    %34 = arith.addf %21, %33 : vector<4x256xf32>
    %c0_16 = arith.constant 0 : index
    %c0_17 = arith.constant 0 : index
    %c3 = arith.constant 3 : index
    %c0_18 = arith.constant 0 : index
    %35 = vector.load %arg1[%c0_16, %c0_17, %c3, %c0_18] : memref<1x4x9x256xbf16, #tpu.memory_space<vmem>>, vector<1x4x1x256xbf16>
    %36 = vector.shape_cast %35 : vector<1x4x1x256xbf16> to vector<4x256xbf16>
    %37 = arith.extf %36 : vector<4x256xbf16> to vector<4x256xf32>
    %cst_19 = arith.constant 0.000000e+00 : f32
    %38 = vector.broadcast %cst_19 : f32 to vector<4x1xf32>
    %39 = vector.extract_strided_slice %37 {offsets = [0, 1], sizes = [4, 255], strides = [1, 1]} : vector<4x256xf32> to vector<4x255xf32>
    %40 = tpu.concatenate %39, %38 in 1 : vector<4x255xf32>, vector<4x1xf32> -> vector<4x256xf32>
    %c15_i32_20 = arith.constant 15 : i32
    %41 = vector.broadcast %c15_i32_20 : i32 to vector<1x256xi32>
    %42 = arith.cmpi slt, %0, %41 : vector<1x256xi32>
    %cst_21 = arith.constant 0.000000e+00 : f32
    %43 = vector.broadcast %cst_21 : f32 to vector<4x256xf32>
    %44 = vector.shape_cast %42 : vector<1x256xi1> to vector<1x256xi1>
    %45 = vector.broadcast %44 : vector<1x256xi1> to vector<4x256xi1>
    %46 = arith.select %45, %40, %43 : vector<4x256xi1>, vector<4x256xf32>
    %47 = arith.addf %34, %46 : vector<4x256xf32>
    %c0_22 = arith.constant 0 : index
    %c0_23 = arith.constant 0 : index
    %c4 = arith.constant 4 : index
    %c0_24 = arith.constant 0 : index
    %48 = vector.load %arg1[%c0_22, %c0_23, %c4, %c0_24] : memref<1x4x9x256xbf16, #tpu.memory_space<vmem>>, vector<1x4x1x256xbf16>
    %49 = vector.shape_cast %48 : vector<1x4x1x256xbf16> to vector<4x256xbf16>
    %50 = arith.extf %49 : vector<4x256xbf16> to vector<4x256xf32>
    %51 = arith.addf %47, %50 : vector<4x256xf32>
    %c0_25 = arith.constant 0 : index
    %c0_26 = arith.constant 0 : index
    %c5 = arith.constant 5 : index
    %c0_27 = arith.constant 0 : index
    %52 = vector.load %arg1[%c0_25, %c0_26, %c5, %c0_27] : memref<1x4x9x256xbf16, #tpu.memory_space<vmem>>, vector<1x4x1x256xbf16>
    %53 = vector.shape_cast %52 : vector<1x4x1x256xbf16> to vector<4x256xbf16>
    %54 = arith.extf %53 : vector<4x256xbf16> to vector<4x256xf32>
    %cst_28 = arith.constant 0.000000e+00 : f32
    %55 = vector.broadcast %cst_28 : f32 to vector<4x1xf32>
    %56 = vector.extract_strided_slice %54 {offsets = [0, 0], sizes = [4, 255], strides = [1, 1]} : vector<4x256xf32> to vector<4x255xf32>
    %57 = tpu.concatenate %55, %56 in 1 : vector<4x1xf32>, vector<4x255xf32> -> vector<4x256xf32>
    %c1_i32_29 = arith.constant 1 : i32
    %58 = vector.broadcast %c1_i32_29 : i32 to vector<1x256xi32>
    %59 = arith.cmpi sge, %0, %58 : vector<1x256xi32>
    %cst_30 = arith.constant 0.000000e+00 : f32
    %60 = vector.broadcast %cst_30 : f32 to vector<4x256xf32>
    %61 = vector.shape_cast %59 : vector<1x256xi1> to vector<1x256xi1>
    %62 = vector.broadcast %61 : vector<1x256xi1> to vector<4x256xi1>
    %63 = arith.select %62, %57, %60 : vector<4x256xi1>, vector<4x256xf32>
    %64 = arith.addf %51, %63 : vector<4x256xf32>
    %c0_31 = arith.constant 0 : index
    %c0_32 = arith.constant 0 : index
    %c6 = arith.constant 6 : index
    %c0_33 = arith.constant 0 : index
    %65 = vector.load %arg1[%c0_31, %c0_32, %c6, %c0_33] : memref<1x4x9x256xbf16, #tpu.memory_space<vmem>>, vector<1x4x1x256xbf16>
    %66 = vector.shape_cast %65 : vector<1x4x1x256xbf16> to vector<4x256xbf16>
    %67 = arith.extf %66 : vector<4x256xbf16> to vector<4x256xf32>
    %cst_34 = arith.constant 0.000000e+00 : f32
    %68 = vector.broadcast %cst_34 : f32 to vector<4x15xf32>
    %69 = vector.extract_strided_slice %67 {offsets = [0, 0], sizes = [4, 241], strides = [1, 1]} : vector<4x256xf32> to vector<4x241xf32>
    %70 = tpu.concatenate %68, %69 in 1 : vector<4x15xf32>, vector<4x241xf32> -> vector<4x256xf32>
    %c15_i32_35 = arith.constant 15 : i32
    %71 = vector.broadcast %c15_i32_35 : i32 to vector<1x256xi32>
    %72 = arith.cmpi slt, %0, %71 : vector<1x256xi32>
    %cst_36 = arith.constant 0.000000e+00 : f32
    %73 = vector.broadcast %cst_36 : f32 to vector<4x256xf32>
    %74 = vector.shape_cast %72 : vector<1x256xi1> to vector<1x256xi1>
    %75 = vector.broadcast %74 : vector<1x256xi1> to vector<4x256xi1>
    %76 = arith.select %75, %70, %73 : vector<4x256xi1>, vector<4x256xf32>
    %77 = arith.addf %64, %76 : vector<4x256xf32>
    %c0_37 = arith.constant 0 : index
    %c0_38 = arith.constant 0 : index
    %c7 = arith.constant 7 : index
    %c0_39 = arith.constant 0 : index
    %78 = vector.load %arg1[%c0_37, %c0_38, %c7, %c0_39] : memref<1x4x9x256xbf16, #tpu.memory_space<vmem>>, vector<1x4x1x256xbf16>
    %79 = vector.shape_cast %78 : vector<1x4x1x256xbf16> to vector<4x256xbf16>
    %80 = arith.extf %79 : vector<4x256xbf16> to vector<4x256xf32>
    %cst_40 = arith.constant 0.000000e+00 : f32
    %81 = vector.broadcast %cst_40 : f32 to vector<4x16xf32>
    %82 = vector.extract_strided_slice %80 {offsets = [0, 0], sizes = [4, 240], strides = [1, 1]} : vector<4x256xf32> to vector<4x240xf32>
    %83 = tpu.concatenate %81, %82 in 1 : vector<4x16xf32>, vector<4x240xf32> -> vector<4x256xf32>
    %84 = arith.addf %77, %83 : vector<4x256xf32>
    %c0_41 = arith.constant 0 : index
    %c0_42 = arith.constant 0 : index
    %c8 = arith.constant 8 : index
    %c0_43 = arith.constant 0 : index
    %85 = vector.load %arg1[%c0_41, %c0_42, %c8, %c0_43] : memref<1x4x9x256xbf16, #tpu.memory_space<vmem>>, vector<1x4x1x256xbf16>
    %86 = vector.shape_cast %85 : vector<1x4x1x256xbf16> to vector<4x256xbf16>
    %87 = arith.extf %86 : vector<4x256xbf16> to vector<4x256xf32>
    %cst_44 = arith.constant 0.000000e+00 : f32
    %88 = vector.broadcast %cst_44 : f32 to vector<4x17xf32>
    %89 = vector.extract_strided_slice %87 {offsets = [0, 0], sizes = [4, 239], strides = [1, 1]} : vector<4x256xf32> to vector<4x239xf32>
    %90 = tpu.concatenate %88, %89 in 1 : vector<4x17xf32>, vector<4x239xf32> -> vector<4x256xf32>
    %c1_i32_45 = arith.constant 1 : i32
    %91 = vector.broadcast %c1_i32_45 : i32 to vector<1x256xi32>
    %92 = arith.cmpi sge, %0, %91 : vector<1x256xi32>
    %cst_46 = arith.constant 0.000000e+00 : f32
    %93 = vector.broadcast %cst_46 : f32 to vector<4x256xf32>
    %94 = vector.shape_cast %92 : vector<1x256xi1> to vector<1x256xi1>
    %95 = vector.broadcast %94 : vector<1x256xi1> to vector<4x256xi1>
    %96 = arith.select %95, %90, %93 : vector<4x256xi1>, vector<4x256xf32>
    %97 = arith.addf %84, %96 : vector<4x256xf32>
    %c0_47 = arith.constant 0 : index
    %c0_48 = arith.constant 0 : index
    %98 = vector.load %arg2[%c0_47, %c0_48] : memref<1x256xf32, #tpu.memory_space<vmem>>, vector<1x256xf32>
    %99 = vector.broadcast %98 : vector<1x256xf32> to vector<4x256xf32>
    %100 = arith.mulf %97, %99 : vector<4x256xf32>
    %101 = arith.truncf %100 : vector<4x256xf32> to vector<4x256xbf16>
    %cst_49 = arith.constant 0.000000e+00 : f32
    %102 = vector.broadcast %cst_49 : f32 to vector<4x256xf32>
    %cst_50 = arith.constant 0.000000e+00 : bf16
    %103 = vector.broadcast %cst_50 : bf16 to vector<4x17xbf16>
    %104 = vector.extract_strided_slice %101 {offsets = [0, 0], sizes = [4, 239], strides = [1, 1]} : vector<4x256xbf16> to vector<4x239xbf16>
    %105 = tpu.concatenate %103, %104 in 1 : vector<4x17xbf16>, vector<4x239xbf16> -> vector<4x256xbf16>
    %c1_i32_51 = arith.constant 1 : i32
    %106 = vector.broadcast %c1_i32_51 : i32 to vector<1x256xi32>
    %107 = arith.cmpi sge, %0, %106 : vector<1x256xi32>
    %cst_52 = arith.constant 0.000000e+00 : bf16
    %108 = vector.broadcast %cst_52 : bf16 to vector<4x256xbf16>
    %109 = vector.shape_cast %107 : vector<1x256xi1> to vector<1x256xi1>
    %110 = vector.broadcast %109 : vector<1x256xi1> to vector<4x256xi1>
    %111 = arith.select %110, %105, %108 : vector<4x256xi1>, vector<4x256xbf16>
    %c0_53 = arith.constant 0 : index
    %c0_54 = arith.constant 0 : index
    %c0_55 = arith.constant 0 : index
    %112 = vector.load %arg4[%c0_53, %c0_54, %c0_55] : memref<9x4x4xbf16, #tpu.memory_space<vmem>>, vector<1x4x4xbf16>
    %113 = vector.shape_cast %112 : vector<1x4x4xbf16> to vector<4x4xbf16>
    %cst_56 = arith.constant dense<0.000000e+00> : vector<4x256xf32>
    %114 = tpu.matmul %113, %111, %cst_56 {dimension_numbers = #tpu.dot_dimension_numbers<[1], [0], [0], [1], [0, 0, 1, 1], [], []>} : vector<4x4xbf16>, vector<4x256xbf16>, vector<4x256xf32> -> vector<4x256xf32>
    %115 = arith.addf %102, %114 : vector<4x256xf32>
    %cst_57 = arith.constant 0.000000e+00 : bf16
    %116 = vector.broadcast %cst_57 : bf16 to vector<4x16xbf16>
    %117 = vector.extract_strided_slice %101 {offsets = [0, 0], sizes = [4, 240], strides = [1, 1]} : vector<4x256xbf16> to vector<4x240xbf16>
    %118 = tpu.concatenate %116, %117 in 1 : vector<4x16xbf16>, vector<4x240xbf16> -> vector<4x256xbf16>
    %c1_58 = arith.constant 1 : index
    %c0_59 = arith.constant 0 : index
    %c0_60 = arith.constant 0 : index
    %119 = vector.load %arg4[%c1_58, %c0_59, %c0_60] : memref<9x4x4xbf16, #tpu.memory_space<vmem>>, vector<1x4x4xbf16>
    %120 = vector.shape_cast %119 : vector<1x4x4xbf16> to vector<4x4xbf16>
    %cst_61 = arith.constant dense<0.000000e+00> : vector<4x256xf32>
    %121 = tpu.matmul %120, %118, %cst_61 {dimension_numbers = #tpu.dot_dimension_numbers<[1], [0], [0], [1], [0, 0, 1, 1], [], []>} : vector<4x4xbf16>, vector<4x256xbf16>, vector<4x256xf32> -> vector<4x256xf32>
    %122 = arith.addf %115, %121 : vector<4x256xf32>
    %cst_62 = arith.constant 0.000000e+00 : bf16
    %123 = vector.broadcast %cst_62 : bf16 to vector<4x15xbf16>
    %124 = vector.extract_strided_slice %101 {offsets = [0, 0], sizes = [4, 241], strides = [1, 1]} : vector<4x256xbf16> to vector<4x241xbf16>
    %125 = tpu.concatenate %123, %124 in 1 : vector<4x15xbf16>, vector<4x241xbf16> -> vector<4x256xbf16>
    %c15_i32_63 = arith.constant 15 : i32
    %126 = vector.broadcast %c15_i32_63 : i32 to vector<1x256xi32>
    %127 = arith.cmpi slt, %0, %126 : vector<1x256xi32>
    %cst_64 = arith.constant 0.000000e+00 : bf16
    %128 = vector.broadcast %cst_64 : bf16 to vector<4x256xbf16>
    %129 = vector.shape_cast %127 : vector<1x256xi1> to vector<1x256xi1>
    %130 = vector.broadcast %129 : vector<1x256xi1> to vector<4x256xi1>
    %131 = arith.select %130, %125, %128 : vector<4x256xi1>, vector<4x256xbf16>
    %c2_65 = arith.constant 2 : index
    %c0_66 = arith.constant 0 : index
    %c0_67 = arith.constant 0 : index
    %132 = vector.load %arg4[%c2_65, %c0_66, %c0_67] : memref<9x4x4xbf16, #tpu.memory_space<vmem>>, vector<1x4x4xbf16>
    %133 = vector.shape_cast %132 : vector<1x4x4xbf16> to vector<4x4xbf16>
    %cst_68 = arith.constant dense<0.000000e+00> : vector<4x256xf32>
    %134 = tpu.matmul %133, %131, %cst_68 {dimension_numbers = #tpu.dot_dimension_numbers<[1], [0], [0], [1], [0, 0, 1, 1], [], []>} : vector<4x4xbf16>, vector<4x256xbf16>, vector<4x256xf32> -> vector<4x256xf32>
    %135 = arith.addf %122, %134 : vector<4x256xf32>
    %cst_69 = arith.constant 0.000000e+00 : bf16
    %136 = vector.broadcast %cst_69 : bf16 to vector<4x1xbf16>
    %137 = vector.extract_strided_slice %101 {offsets = [0, 0], sizes = [4, 255], strides = [1, 1]} : vector<4x256xbf16> to vector<4x255xbf16>
    %138 = tpu.concatenate %136, %137 in 1 : vector<4x1xbf16>, vector<4x255xbf16> -> vector<4x256xbf16>
    %c1_i32_70 = arith.constant 1 : i32
    %139 = vector.broadcast %c1_i32_70 : i32 to vector<1x256xi32>
    %140 = arith.cmpi sge, %0, %139 : vector<1x256xi32>
    %cst_71 = arith.constant 0.000000e+00 : bf16
    %141 = vector.broadcast %cst_71 : bf16 to vector<4x256xbf16>
    %142 = vector.shape_cast %140 : vector<1x256xi1> to vector<1x256xi1>
    %143 = vector.broadcast %142 : vector<1x256xi1> to vector<4x256xi1>
    %144 = arith.select %143, %138, %141 : vector<4x256xi1>, vector<4x256xbf16>
    %c3_72 = arith.constant 3 : index
    %c0_73 = arith.constant 0 : index
    %c0_74 = arith.constant 0 : index
    %145 = vector.load %arg4[%c3_72, %c0_73, %c0_74] : memref<9x4x4xbf16, #tpu.memory_space<vmem>>, vector<1x4x4xbf16>
    %146 = vector.shape_cast %145 : vector<1x4x4xbf16> to vector<4x4xbf16>
    %cst_75 = arith.constant dense<0.000000e+00> : vector<4x256xf32>
    %147 = tpu.matmul %146, %144, %cst_75 {dimension_numbers = #tpu.dot_dimension_numbers<[1], [0], [0], [1], [0, 0, 1, 1], [], []>} : vector<4x4xbf16>, vector<4x256xbf16>, vector<4x256xf32> -> vector<4x256xf32>
    %148 = arith.addf %135, %147 : vector<4x256xf32>
    %c4_76 = arith.constant 4 : index
    %c0_77 = arith.constant 0 : index
    %c0_78 = arith.constant 0 : index
    %149 = vector.load %arg4[%c4_76, %c0_77, %c0_78] : memref<9x4x4xbf16, #tpu.memory_space<vmem>>, vector<1x4x4xbf16>
    %150 = vector.shape_cast %149 : vector<1x4x4xbf16> to vector<4x4xbf16>
    %cst_79 = arith.constant dense<0.000000e+00> : vector<4x256xf32>
    %151 = tpu.matmul %150, %101, %cst_79 {dimension_numbers = #tpu.dot_dimension_numbers<[1], [0], [0], [1], [0, 0, 1, 1], [], []>} : vector<4x4xbf16>, vector<4x256xbf16>, vector<4x256xf32> -> vector<4x256xf32>
    %152 = arith.addf %148, %151 : vector<4x256xf32>
    %cst_80 = arith.constant 0.000000e+00 : bf16
    %153 = vector.broadcast %cst_80 : bf16 to vector<4x1xbf16>
    %154 = vector.extract_strided_slice %101 {offsets = [0, 1], sizes = [4, 255], strides = [1, 1]} : vector<4x256xbf16> to vector<4x255xbf16>
    %155 = tpu.concatenate %154, %153 in 1 : vector<4x255xbf16>, vector<4x1xbf16> -> vector<4x256xbf16>
    %c15_i32_81 = arith.constant 15 : i32
    %156 = vector.broadcast %c15_i32_81 : i32 to vector<1x256xi32>
    %157 = arith.cmpi slt, %0, %156 : vector<1x256xi32>
    %cst_82 = arith.constant 0.000000e+00 : bf16
    %158 = vector.broadcast %cst_82 : bf16 to vector<4x256xbf16>
    %159 = vector.shape_cast %157 : vector<1x256xi1> to vector<1x256xi1>
    %160 = vector.broadcast %159 : vector<1x256xi1> to vector<4x256xi1>
    %161 = arith.select %160, %155, %158 : vector<4x256xi1>, vector<4x256xbf16>
    %c5_83 = arith.constant 5 : index
    %c0_84 = arith.constant 0 : index
    %c0_85 = arith.constant 0 : index
    %162 = vector.load %arg4[%c5_83, %c0_84, %c0_85] : memref<9x4x4xbf16, #tpu.memory_space<vmem>>, vector<1x4x4xbf16>
    %163 = vector.shape_cast %162 : vector<1x4x4xbf16> to vector<4x4xbf16>
    %cst_86 = arith.constant dense<0.000000e+00> : vector<4x256xf32>
    %164 = tpu.matmul %163, %161, %cst_86 {dimension_numbers = #tpu.dot_dimension_numbers<[1], [0], [0], [1], [0, 0, 1, 1], [], []>} : vector<4x4xbf16>, vector<4x256xbf16>, vector<4x256xf32> -> vector<4x256xf32>
    %165 = arith.addf %152, %164 : vector<4x256xf32>
    %cst_87 = arith.constant 0.000000e+00 : bf16
    %166 = vector.broadcast %cst_87 : bf16 to vector<4x15xbf16>
    %167 = vector.extract_strided_slice %101 {offsets = [0, 15], sizes = [4, 241], strides = [1, 1]} : vector<4x256xbf16> to vector<4x241xbf16>
    %168 = tpu.concatenate %167, %166 in 1 : vector<4x241xbf16>, vector<4x15xbf16> -> vector<4x256xbf16>
    %c1_i32_88 = arith.constant 1 : i32
    %169 = vector.broadcast %c1_i32_88 : i32 to vector<1x256xi32>
    %170 = arith.cmpi sge, %0, %169 : vector<1x256xi32>
    %cst_89 = arith.constant 0.000000e+00 : bf16
    %171 = vector.broadcast %cst_89 : bf16 to vector<4x256xbf16>
    %172 = vector.shape_cast %170 : vector<1x256xi1> to vector<1x256xi1>
    %173 = vector.broadcast %172 : vector<1x256xi1> to vector<4x256xi1>
    %174 = arith.select %173, %168, %171 : vector<4x256xi1>, vector<4x256xbf16>
    %c6_90 = arith.constant 6 : index
    %c0_91 = arith.constant 0 : index
    %c0_92 = arith.constant 0 : index
    %175 = vector.load %arg4[%c6_90, %c0_91, %c0_92] : memref<9x4x4xbf16, #tpu.memory_space<vmem>>, vector<1x4x4xbf16>
    %176 = vector.shape_cast %175 : vector<1x4x4xbf16> to vector<4x4xbf16>
    %cst_93 = arith.constant dense<0.000000e+00> : vector<4x256xf32>
    %177 = tpu.matmul %176, %174, %cst_93 {dimension_numbers = #tpu.dot_dimension_numbers<[1], [0], [0], [1], [0, 0, 1, 1], [], []>} : vector<4x4xbf16>, vector<4x256xbf16>, vector<4x256xf32> -> vector<4x256xf32>
    %178 = arith.addf %165, %177 : vector<4x256xf32>
    %cst_94 = arith.constant 0.000000e+00 : bf16
    %179 = vector.broadcast %cst_94 : bf16 to vector<4x16xbf16>
    %180 = vector.extract_strided_slice %101 {offsets = [0, 16], sizes = [4, 240], strides = [1, 1]} : vector<4x256xbf16> to vector<4x240xbf16>
    %181 = tpu.concatenate %180, %179 in 1 : vector<4x240xbf16>, vector<4x16xbf16> -> vector<4x256xbf16>
    %c7_95 = arith.constant 7 : index
    %c0_96 = arith.constant 0 : index
    %c0_97 = arith.constant 0 : index
    %182 = vector.load %arg4[%c7_95, %c0_96, %c0_97] : memref<9x4x4xbf16, #tpu.memory_space<vmem>>, vector<1x4x4xbf16>
    %183 = vector.shape_cast %182 : vector<1x4x4xbf16> to vector<4x4xbf16>
    %cst_98 = arith.constant dense<0.000000e+00> : vector<4x256xf32>
    %184 = tpu.matmul %183, %181, %cst_98 {dimension_numbers = #tpu.dot_dimension_numbers<[1], [0], [0], [1], [0, 0, 1, 1], [], []>} : vector<4x4xbf16>, vector<4x256xbf16>, vector<4x256xf32> -> vector<4x256xf32>
    %185 = arith.addf %178, %184 : vector<4x256xf32>
    %cst_99 = arith.constant 0.000000e+00 : bf16
    %186 = vector.broadcast %cst_99 : bf16 to vector<4x17xbf16>
    %187 = vector.extract_strided_slice %101 {offsets = [0, 17], sizes = [4, 239], strides = [1, 1]} : vector<4x256xbf16> to vector<4x239xbf16>
    %188 = tpu.concatenate %187, %186 in 1 : vector<4x239xbf16>, vector<4x17xbf16> -> vector<4x256xbf16>
    %c15_i32_100 = arith.constant 15 : i32
    %189 = vector.broadcast %c15_i32_100 : i32 to vector<1x256xi32>
    %190 = arith.cmpi slt, %0, %189 : vector<1x256xi32>
    %cst_101 = arith.constant 0.000000e+00 : bf16
    %191 = vector.broadcast %cst_101 : bf16 to vector<4x256xbf16>
    %192 = vector.shape_cast %190 : vector<1x256xi1> to vector<1x256xi1>
    %193 = vector.broadcast %192 : vector<1x256xi1> to vector<4x256xi1>
    %194 = arith.select %193, %188, %191 : vector<4x256xi1>, vector<4x256xbf16>
    %c8_102 = arith.constant 8 : index
    %c0_103 = arith.constant 0 : index
    %c0_104 = arith.constant 0 : index
    %195 = vector.load %arg4[%c8_102, %c0_103, %c0_104] : memref<9x4x4xbf16, #tpu.memory_space<vmem>>, vector<1x4x4xbf16>
    %196 = vector.shape_cast %195 : vector<1x4x4xbf16> to vector<4x4xbf16>
    %cst_105 = arith.constant dense<0.000000e+00> : vector<4x256xf32>
    %197 = tpu.matmul %196, %194, %cst_105 {dimension_numbers = #tpu.dot_dimension_numbers<[1], [0], [0], [1], [0, 0, 1, 1], [], []>} : vector<4x4xbf16>, vector<4x256xbf16>, vector<4x256xf32> -> vector<4x256xf32>
    %198 = arith.addf %185, %197 : vector<4x256xf32>
    %c0_106 = arith.constant 0 : index
    %c0_107 = arith.constant 0 : index
    %199 = vector.load %arg5[%c0_106, %c0_107] : memref<4x1xf32, #tpu.memory_space<vmem>>, vector<4x1xf32>
    %200 = vector.broadcast %199 : vector<4x1xf32> to vector<4x256xf32>
    %201 = arith.addf %198, %200 : vector<4x256xf32>
    %c0_108 = arith.constant 0 : index
    %c0_109 = arith.constant 0 : index
    %c0_110 = arith.constant 0 : index
    %202 = vector.load %arg6[%c0_108, %c0_109, %c0_110] : memref<1x4x256xf32, #tpu.memory_space<vmem>>, vector<1x4x256xf32>
    %203 = vector.shape_cast %202 : vector<1x4x256xf32> to vector<4x256xf32>
    %204 = vector.shape_cast %201 : vector<4x256xf32> to vector<1x4x256xf32>
    tpu.vector_store %arg6[%c0_108, %c0_109, %c0_110], %204 {strides = array<i32>} : memref<1x4x256xf32, #tpu.memory_space<vmem>>, vector<1x4x256xf32>,
    return
  }
  func.func @transform_0(%arg0: i32) -> (i32, i32, i32, i32) {
    %c0_i32 = arith.constant 0 : i32
    %c0_i32_0 = arith.constant 0 : i32
    %c0_i32_1 = arith.constant 0 : i32
    %c0_i32_2 = arith.constant 0 : i32
    return %arg0, %c0_i32, %c0_i32_0, %c0_i32_1 : i32, i32, i32, i32
  }
  func.func @transform_1(%arg0: i32) -> (i32, i32) {
    %c0_i32 = arith.constant 0 : i32
    %c0_i32_0 = arith.constant 0 : i32
    %c0_i32_1 = arith.constant 0 : i32
    return %c0_i32, %c0_i32_0 : i32, i32
  }
  func.func @transform_2(%arg0: i32) -> (i32, i32) {
    %c0_i32 = arith.constant 0 : i32
    %c0_i32_0 = arith.constant 0 : i32
    %c0_i32_1 = arith.constant 0 : i32
    return %c0_i32, %c0_i32_0 : i32, i32
  }
  func.func @transform_3(%arg0: i32) -> (i32, i32, i32) {
    %c0_i32 = arith.constant 0 : i32
    %c0_i32_0 = arith.constant 0 : i32
    %c0_i32_1 = arith.constant 0 : i32
    %c0_i32_2 = arith.constant 0 : i32
    return %c0_i32, %c0_i32_0, %c0_i32_1 : i32, i32, i32
  }
  func.func @transform_4(%arg0: i32) -> (i32, i32) {
    %c0_i32 = arith.constant 0 : i32
    %c0_i32_0 = arith.constant 0 : i32
    %c0_i32_1 = arith.constant 0 : i32
    return %c0_i32, %c0_i32_0 : i32, i32
  }
  func.func @transform_5(%arg0: i32) -> (i32, i32, i32) {
    %c0_i32 = arith.constant 0 : i32
    %c0_i32_0 = arith.constant 0 : i32
    %c0_i32_1 = arith.constant 0 : i32
    return %arg0, %c0_i32, %c0_i32_0 : i32, i32, i32
  }
}

</mosaic_0001>

<bundles_post_ra>
// kernel: _lambda_.4
= control target key start
LH: loop header
LB: loop body
LE: loop exit
PB: predicated region body
PF: predicated region fallthrough
CT: control target
= control target key end

     0   :  { %s484_s12 = smov 0   ;;  %s486_s13 = smov 0   ;;  %s526_s0 = inlined_call_operand.vmem [shape: bf16[12,4], index: 0, kind: input, shape index: {}]   ;;  %s527_s1 = inlined_call_operand.vmem [shape: f32[12,1], index: 1, kind: input, shape index: {}]   ;;  %s528_s2 = inlined_call_operand.vmem [shape: f32[2,4,256], index: 2, kind: input, shape index: {}]   ;;  %s529_s3 = inlined_call_operand.vmem [shape: bf16[2,12,256], index: 3, kind: output, shape index: {}]  }
   0x1   :  { %s488_s14 = smov 0  }
   0x2 LB: > { %s25_s15 = sadd.s32 1, %s457_s13  ;;  %p395_p0 = scmp.ge.s32.totalorder %s461_s14, 1  ;;  %s461_s14 = sphi %s488_s14, %s13_s14   ;;  %s457_s13 = sphi %s486_s13, %s531_s13   ;;  %s453_s12 = sphi %s484_s12, %s530_s12  }
   0x3   : > { %p27_p1 = scmp.ge.s32.totalorder %s25_s15, 2  ;;  %p158_p2 = scmp.lt.s32.totalorder %s461_s14, 3 }
   0x5   : > { %s533_s15 = smov (%p27_p1, %s25_s15), 0  ;;  %p159_p3 = pnand %p395_p0, %p158_p2 }
   0x6   : > { %p191_p4 = scmp.lt.s32.totalorder (!%p159_p3), %s453_s12, 1 }
   0x7   : > { %162 = sbr.rel (%p159_p3) target bundleno = 228 (0xe4), region = 32 }
   0xc   : > { %v463_v0 = vmov 0   ;;  %v219_v1 = vld [vmem:[%s527_s1] sm:$0xff]  ;;  %s535_s12 = smov (!%p191_p4, %s453_s12), 1  ;;  %v220_v2 = vld [vmem:[%s527_s1 + $0x8] sm:$0xf]  ;;  %vm240_vm0 = vcmask 1041408  }
   0xd   : > { %279 = vmatprep.mubr.bf16.mxu0 %v463_v0  ;;  %436 = vset.pattern.permute.xlu0 %v463_v0  ;;  %s407_s20 = sshll.u32 %s535_s12, 3  ;;  %v438_v8 = vld [vmem:[%s526_s0] sm:$0x3f]   ;;  %vm236_vm1 = vcmask 31744   ;;  %s408_s26 = sshll.u32 %s535_s12, 4 }
   0xe   : > { %223 = vperm.xlu0 %436, %v219_v1   ;;  %s198_s23 = scalar_lea.vmem %s528_s2, %s407_s20  ;;  %s208_s29 = scalar_lea.vmem %s529_s3, %s408_s26 }
   0xf   : > { %v213_v3 = vld [vmem:[%s198_s23] sm:$0xff] }
  0x10   : > { %v215_v4 = vcombine.high %v213_v3, %v213_v3  ;;  %v217_v5 = vpack.c.bf16 %v213_v3, %v213_v3 }
  0x12   : > { %228 = vperm.xlu0 %436, %v220_v2   ;;  %v218_v6 = vpack.c.bf16 %v215_v4, %v215_v4  ;;  %v242_v7 = vsel %vm240_vm0, %v217_v5, 0 }
  0x14   : > { %401 = vmatprep.subr.msk.bf16.mxu0 %vm240_vm0, %v218_v6 }
  0x15   : > { %262 = vmatpush1.bf16.msra.mxu0 %v242_v7 }
  0x18   : > { %402 = vmatmul.mubr.msk.bf16.vlgmr.msra.gmra.mxu0 %vm236_vm1, %v438_v8 }
  0x89   : > { %v224_v9 = vpop.permute.xlu0 %223 }
  0x8d   : > { %v229_v16 = vpop.permute.xlu0 %228 }
  0xd8   : > { %v281_v10 = vpop.f32.mrf.mxu0 }
  0xd9   : > { %v282_v12 = vadd.f32 %v281_v10, %v224_v9 }
  0xda   : > { %v283_v11 = vpop.f32.mrf.mxu0 }
  0xdb   : > { %v284_v13 = vadd.f32 %v283_v11, %v224_v9 }
  0xdc   : > { %v285_v14 = vpop.f32.mrf.mxu0 }
  0xdd   : > { %v409_v15 = vpack.c.bf16 %v284_v13, %v282_v12  ;;  %v286_v18 = vadd.f32 %v285_v14, %v229_v16 }
  0xde   : > { %v287_v17 = vpop.f32.mrf.mxu0 }
  0xdf   : > { %302 = vst [vmem:[%s208_s29] sm:$0xff] %v409_v15  ;;  %v288_v19 = vadd.f32 %v287_v17, %v229_v16 }
  0xe1   : > { %v410_v20 = vpack.c.bf16 %v288_v19, %v286_v18 }
  0xe3   : > { %303 = vst [vmem:[%s208_s29 + $0x8] sm:$0x33] %v410_v20 }
  0xe4 PF: > { %s13_s14 = sadd.s32 1, %s461_s14   ;;  %s530_s12 = smov %s457_s13 }
  0xe5   : > { %p10_p5 = scmp.ge.s32.totalorder %s13_s14, 4   ;;  %s531_s13 = smov %s533_s15 }
  0xe7   :  { %12 = sbr.rel (!%p10_p5) target bundleno = 2 (0x2), region = 62 }

// kernel: _lambda_.5
= control target key start
LH: loop header
LB: loop body
LE: loop exit
PB: predicated region body
PF: predicated region fallthrough
CT: control target
= control target key end

     0   :  { %v1496_v3 = vmov 0   ;;  %vm473_vm0 = vcmask 1041408   ;;  %vm32_vm1 = vcmask 139264   ;;  %vm18_vm2 = vcmask 146432   ;;  %s2101_s0 = inlined_call_operand.vmem [shape: bf16[4,18,256], index: 0, kind: input, shape index: {}]   ;;  %s2102_s1 = inlined_call_operand.vmem [shape: bf16[4,18,256], index: 1, kind: input, shape index: {}]   ;;  %s2103_s3 = inlined_call_operand.vmem [shape: f32[4,1,18], index: 3, kind: output, shape index: {1}]   ;;  %s2104_s2 = inlined_call_operand.vmem [shape: f32[4,18,18], index: 2, kind: output, shape index: {0}]  }
   0x1   :  { %v40_v0 = vld [vmem:[%s2101_s0 + $0x18] sm:$0xff]  ;;  %v37_v1 = vld [vmem:[%s2101_s0] sm:$0xff]  ;;  %1475 = vset.pattern.permute.xlu0 %v1496_v3  ;;  %1474 = vset.pattern.permute.xlu1 %v1496_v3  ;;  %v38_v7 = vld [vmem:[%s2101_s0 + $0x8] sm:$0xff]  ;;  %vm21_vm3 = vcmask 140288   ;;  %vm1311_vm4 = vcmask 130112   ;;  %vm1318_vm5 = vcmask 195712  }
   0x2   :  { %v41_v2 = vld [vmem:[%s2101_s0 + $0x20] sm:$0xff]  ;;  %v1531_v4 = vmax.bf16 %v1496_v3, %v40_v0  ;;  %v1534_v5 = vmax.bf16 %v1496_v3, %v37_v1  ;;  %v44_v8 = vld [vmem:[%s2101_s0 + $0x38] sm:$0xff]  ;;  %v43_v9 = vld [vmem:[%s2101_s0 + $0x30] sm:$0xff]  ;;  %v1549_v10 = vmax.bf16 %v1496_v3, %v38_v7 }
   0x3   :  { %v1537_v6 = vmax.bf16 %v1496_v3, %v41_v2  ;;  %v1552_v11 = vmax.bf16 %v1496_v3, %v44_v8  ;;  %v1555_v12 = vmax.bf16 %v1496_v3, %v43_v9  ;;  %v47_v17 = vld [vmem:[%s2101_s0 + $0x50] sm:$0xff]  ;;  %v46_v18 = vld [vmem:[%s2101_s0 + $0x48] sm:$0xff]  ;;  %v48_v27 = vld [vmem:[%s2101_s0 + $0x58] sm:$0x11] }
   0x4   :  { %v449_v13 = vunpack.c.l.bf16 %v1531_v4  ;;  %v450_v14 = vunpack.c.h.bf16 %v1531_v4  ;;  %v443_v15 = vunpack.c.l.bf16 %v1534_v5  ;;  %v444_v16 = vunpack.c.h.bf16 %v1534_v5  ;;  %v42_v23 = vld [vmem:[%s2101_s0 + $0x28] sm:$0x11]  ;;  %v39_v24 = vld [vmem:[%s2101_s0 + $0x10] sm:$0x11]  ;;  %v45_v49 = vld [vmem:[%s2101_s0 + $0x40] sm:$0x11] }
   0x5   :  { %v451_v19 = vunpack.c.l.bf16 %v1537_v6  ;;  %v452_v20 = vunpack.c.h.bf16 %v1537_v6  ;;  %v445_v21 = vunpack.c.l.bf16 %v1549_v10  ;;  %v446_v22 = vunpack.c.h.bf16 %v1549_v10  ;;  %v75_v50 = vld [vmem:[%s2102_s1 + $0x10] sm:$0x11]  ;;  %v78_v51 = vld [vmem:[%s2102_s1 + $0x28] sm:$0x11]  ;;  %v1482_v62 = vld [vmem:[%s2102_s1 + $0x1c] ss:$8 sps:$4 sm:$0xff]  }
   0x6   :  { %v479_v25 = vadd.f32 %v450_v14, %v449_v13  ;;  %v467_v26 = vadd.f32 %v444_v16, %v443_v15  ;;  %v457_v30 = vunpack.c.l.bf16 %v1552_v11  ;;  %v458_v31 = vunpack.c.h.bf16 %v1552_v11  ;;  %v1480_v61 = vld [vmem:[%s2102_s1 + $0x4] ss:$8 sps:$4 sm:$0xff]   ;;  %v84_v16 = vld [vmem:[%s2102_s1 + $0x58] sm:$0x11] }
   0x7   :  { %v482_v28 = vadd.f32 %v452_v20, %v451_v19  ;;  %v470_v29 = vadd.f32 %v446_v22, %v445_v21  ;;  %v455_v32 = vunpack.c.l.bf16 %v1555_v12  ;;  %v456_v33 = vunpack.c.h.bf16 %v1555_v12  ;;  %v81_v15 = vld [vmem:[%s2102_s1 + $0x40] sm:$0x11] }
   0x8   :  { %480 = vadd.xlane.f32.xlu1 %v479_v25  ;;  %468 = vadd.xlane.f32.xlu0 %v467_v26  ;;  %v1585_v34 = vmax.bf16 %v1496_v3, %v47_v17  ;;  %v1588_v35 = vmax.bf16 %v1496_v3, %v46_v18  ;;  %v1591_v36 = vmax.bf16 %v1496_v3, %v42_v23  ;;  %v1484_v21 = vld [vmem:[%s2102_s1] ss:$8 sps:$4 sm:$0xff]  }
   0x9   :  { %v1594_v37 = vmax.bf16 %v1496_v3, %v39_v24  ;;  %v1597_v38 = vmax.bf16 %v1496_v3, %v48_v27  ;;  %v493_v45 = vadd.f32 %v458_v31, %v457_v30  ;;  %v490_v46 = vadd.f32 %v456_v33, %v455_v32  ;;  %v1485_v22 = vld [vmem:[%s2102_s1 + $0x18] ss:$8 sps:$4 sm:$0xff]   ;;  %v1492_v33 = vld [vmem:[%s2102_s1 + $0x34] ss:$8 sps:$4 sm:$0xff]  }
   0xa   :  { %v463_v39 = vunpack.c.l.bf16 %v1585_v34  ;;  %v464_v40 = vunpack.c.h.bf16 %v1585_v34  ;;  %v461_v41 = vunpack.c.l.bf16 %v1588_v35  ;;  %v462_v42 = vunpack.c.h.bf16 %v1588_v35 }
   0xb   :  { %v453_v43 = vunpack.c.l.bf16 %v1591_v36  ;;  %v454_v44 = vunpack.c.h.bf16 %v1591_v36  ;;  %v447_v47 = vunpack.c.l.bf16 %v1594_v37  ;;  %v448_v48 = vunpack.c.h.bf16 %v1594_v37 }
   0xc   :  { %483 = vadd.xlane.f32.xlu1 %v482_v28  ;;  %471 = vadd.xlane.f32.xlu0 %v470_v29  ;;  %v504_v52 = vadd.f32 %v464_v40, %v463_v39  ;;  %v501_v53 = vadd.f32 %v462_v42, %v461_v41  ;;  %v465_v55 = vunpack.c.l.bf16 %v1597_v38  ;;  %v466_v56 = vunpack.c.h.bf16 %v1597_v38  ;;  %v1495_v39 = vld [vmem:[%s2102_s1 + $0x4c] ss:$8 sps:$4 sm:$0xff]  }
   0xd   :  { %v485_v54 = vsel %vm473_vm0, %v453_v43, 0.0  ;;  %v486_v57 = vsel %vm473_vm0, %v454_v44, 0.0  ;;  %v1621_v58 = vmax.bf16 %v1496_v3, %v45_v49  ;;  %v1446_v59 = vcombine.high %v75_v50, %v75_v50 }
   0xe   :  { %v1454_v60 = vcombine.high %v78_v51, %v78_v51  ;;  %v474_v63 = vsel %vm473_vm0, %v447_v47, 0.0  ;;  %v475_v0 = vsel %vm473_vm0, %v448_v48, 0.0  ;;  %v1445_v1 = vcombine.low %v75_v50, %v75_v50 }
   0xf   :  { %v1453_v2 = vcombine.low %v78_v51, %v78_v51  ;;  %v459_v3 = vunpack.c.l.bf16 %v1621_v58  ;;  %v460_v7 = vunpack.c.h.bf16 %v1621_v58  ;;  %131 = vmatprep.subr.bf16.mxu0 %v1446_v59  ;;  %v1440_v8 = vcombine.high %v1534_v5, %v1549_v10 }
  0x10   :  { %494 = vadd.xlane.f32.xlu1 %v493_v45  ;;  %491 = vadd.xlane.f32.xlu0 %v490_v46  ;;  %v1448_v9 = vcombine.high %v1531_v4, %v1537_v6  ;;  %v487_v13 = vadd.f32 %v486_v57, %v485_v54  ;;  %v476_v14 = vadd.f32 %v475_v0, %v474_v63  ;;  %v507_v17 = vsel %vm473_vm0, %v465_v55, 0.0 }
  0x11   :  { %213 = vmatprep.subr.bf16.mxu1 %v1454_v60  ;;  %132 = vmatpush1.bf16.xpose.msra.mxu0 %v1445_v1  ;;  %v508_v18 = vsel %vm473_vm0, %v466_v56, 0.0  ;;  %v496_v19 = vsel %vm473_vm0, %v459_v3, 0.0  ;;  %v497_v20 = vsel %vm473_vm0, %v460_v7, 0.0  ;;  %v1462_v23 = vcombine.high %v81_v15, %v81_v15 }
  0x12   :  { %214 = vmatpush1.bf16.xpose.msra.mxu1 %v1453_v2  ;;  %133 = vmatprep.subr.bf16.mxu0 %v1480_v61  ;;  %v1470_v24 = vcombine.high %v84_v16, %v84_v16  ;;  %v509_v25 = vadd.f32 %v508_v18, %v507_v17  ;;  %v498_v26 = vadd.f32 %v497_v20, %v496_v19 }
  0x13   :  { %215 = vmatprep.subr.bf16.mxu1 %v1482_v62  ;;  %151 = vmatprep.mubr.bf16.mxu0 %v1440_v8  ;;  %v1439_v27 = vcombine.low %v1534_v5, %v1549_v10  ;;  %v1447_v28 = vcombine.low %v1531_v4, %v1537_v6  ;;  %v1461_v29 = vcombine.low %v81_v15, %v81_v15  ;;  %v1490_v6 = vld [vmem:[%s2102_s1 + $0x30] ss:$8 sps:$4 sm:$0xff]  }
  0x14   :  { %505 = vadd.xlane.f32.xlu1 %v504_v52  ;;  %502 = vadd.xlane.f32.xlu0 %v501_v53  ;;  %v1469_v30 = vcombine.low %v84_v16, %v84_v16  ;;  %v1442_v31 = vcombine.high %v1594_v37, %v1594_v37  ;;  %v1450_v32 = vcombine.high %v1591_v36, %v1591_v36  ;;  %v1493_v10 = vld [vmem:[%s2102_s1 + $0x48] ss:$8 sps:$4 sm:$0xff]  }
  0x15   :  { %233 = vmatprep.mubr.bf16.mxu1 %v1448_v9  ;;  %v1441_v4 = vcombine.low %v1594_v37, %v1594_v37  ;;  %v1449_v5 = vcombine.low %v1591_v36, %v1591_v36  ;;  %v1456_v40 = vcombine.high %v1555_v12, %v1552_v11  ;;  %v1464_v41 = vcombine.high %v1588_v35, %v1585_v34 }
  0x16   :  { %v1455_v36 = vcombine.low %v1555_v12, %v1552_v11  ;;  %v1463_v37 = vcombine.low %v1588_v35, %v1585_v34  ;;  %v1458_v42 = vcombine.high %v1621_v58, %v1621_v58  ;;  %v1466_v43 = vcombine.high %v1597_v38, %v1597_v38 }
  0x17   :  { %v1457_v44 = vcombine.low %v1621_v58, %v1621_v58  ;;  %v1465_v45 = vcombine.low %v1597_v38, %v1597_v38  ;;  %v524_v11 = vlaneseq  ;;  %v1497_v12 = vmov 1966171168  }
  0x18   :  { %488 = vadd.xlane.f32.xlu1 %v487_v13  ;;  %477 = vadd.xlane.f32.xlu0 %v476_v14  ;;  %v817_v34 = vunpack.c.l.s4 %v1497_v12 }
  0x19   :  { %134 = vmatpush1.bf16.xpose.msra.mxu0 %v1484_v21  ;;  %v1694_v35 = vshrl.u32 %v524_v11, 7 }
  0x1a   :  { %216 = vmatpush1.bf16.xpose.msra.mxu1 %v1485_v22  ;;  %295 = vmatprep.subr.bf16.mxu0 %v1462_v23  ;;  %v818_v46 = vunpack.c.0.s8 %v817_v34 }
  0x1b   :  { %377 = vmatprep.subr.bf16.mxu1 %v1470_v24  ;;  %v1697_v47 = vsub.s32 0, %v1694_v35  ;;  %v1700_v48 = vsub.s32 1, %v1694_v35  ;;  %v1703_v49 = vsub.s32 2, %v1694_v35  ;;  %v1706_v38 = vsub.s32 3, %v1694_v35 }
  0x1c   :  { %510 = vadd.xlane.f32.xlu1 %v509_v25  ;;  %499 = vadd.xlane.f32.xlu0 %v498_v26  ;;  %v1709_v50 = vsub.s32 4, %v1694_v35  ;;  %v1712_v51 = vsub.s32 5, %v1694_v35  ;;  %v1715_v52 = vsub.s32 6, %v1694_v35  ;;  %v1718_v53 = vsub.s32 7, %v1694_v35 }
  0x1d   :  { %v1721_v56 = vsub.s32 %v818_v46, %v1694_v35 }
  0x20   :  { %152 = vmatmul.mubr.bf16.vlgmr.msra.gmra.mxu0 %v1439_v27 }
  0x21   :  { %234 = vmatmul.mubr.bf16.vlgmr.msra.gmra.mxu1 %v1447_v28  ;;  %296 = vmatpush1.bf16.xpose.msra.mxu0 %v1461_v29 }
  0x22   :  { %378 = vmatpush1.bf16.xpose.msra.mxu1 %v1469_v30  ;;  %159 = vmatprep.mubr.bf16.mxu0 %v1442_v31 }
  0x23   :  { %241 = vmatprep.mubr.bf16.mxu1 %v1450_v32  ;;  %297 = vmatprep.subr.bf16.mxu0 %v1492_v33 }
  0x24   :  { %379 = vmatprep.subr.bf16.mxu1 %v1495_v39 }
  0x28   :  { %160 = vmatmul.mubr.bf16.gmra.mxu0 %v1441_v4 }
  0x29   :  { %242 = vmatmul.mubr.bf16.gmra.mxu1 %v1449_v5  ;;  %298 = vmatpush1.bf16.xpose.msra.mxu0 %v1490_v6 }
  0x2a   :  { %380 = vmatpush1.bf16.xpose.msra.mxu1 %v1493_v10  ;;  %315 = vmatprep.mubr.bf16.mxu0 %v1456_v40 }
  0x2b   :  { %397 = vmatprep.mubr.bf16.mxu1 %v1464_v41 }
  0x30   :  { %316 = vmatmul.mubr.bf16.vlgmr.msra.gmra.mxu0 %v1455_v36 }
  0x31   :  { %398 = vmatmul.mubr.bf16.vlgmr.msra.gmra.mxu1 %v1463_v37  ;;  %323 = vmatprep.mubr.bf16.mxu0 %v1458_v42 }
  0x32   :  { %405 = vmatprep.mubr.bf16.mxu1 %v1466_v43 }
  0x38   :  { %324 = vmatmul.mubr.bf16.gmra.mxu0 %v1457_v44 }
  0x39   :  { %406 = vmatmul.mubr.bf16.gmra.mxu1 %v1465_v45 }
  0x91   :  { %v481_v54 = vpop.xlane.xlu1 %480  ;;  %v469_v55 = vpop.xlane.xlu0 %468 }
  0x92   :  { %v527_v57 = vrot.slane %v469_v55, %v1697_v47  ;;  %v531_v58 = vrot.slane %v469_v55, %v1700_v48  ;;  %v535_v59 = vrot.slane %v469_v55, %v1703_v49  ;;  %v539_v60 = vrot.slane %v469_v55, %v1706_v38 }
  0x93   :  { %v543_v61 = vrot.slane %v469_v55, %v1709_v50  ;;  %v547_v62 = vrot.slane %v469_v55, %v1712_v51  ;;  %v551_v63 = vrot.slane %v469_v55, %v1715_v52  ;;  %v555_v0 = vrot.slane %v469_v55, %v1718_v53 }
  0x94   :  { %v812_v1 = vcombine.low %v527_v57, %v531_v58  ;;  %v813_v2 = vcombine.low %v535_v59, %v539_v60  ;;  %v599_v3 = vrot.slane %v481_v54, %v1697_v47  ;;  %v603_v7 = vrot.slane %v481_v54, %v1700_v48 }
  0x95   :  { %v1733_v8 = vpop.xlane.xlu1 %483  ;;  %v472_v9 = vpop.xlane.xlu0 %471  ;;  %v814_v13 = vcombine.low %v543_v61, %v547_v62  ;;  %v815_v14 = vcombine.low %v551_v63, %v555_v0  ;;  %v607_v15 = vrot.slane %v481_v54, %v1703_v49  ;;  %v611_v16 = vrot.slane %v481_v54, %v1706_v38 }
  0x96   :  { %v822_v17 = vrot.slane %v812_v1, %v1721_v56  ;;  %v829_v18 = vrot.slane %v813_v2, %v1721_v56  ;;  %v559_v19 = vrot.slane %v472_v9, %v1697_v47  ;;  %v563_v20 = vrot.slane %v472_v9, %v1700_v48 }
  0x97   :  { %v836_v21 = vrot.slane %v814_v13, %v1721_v56  ;;  %v843_v22 = vrot.slane %v815_v14, %v1721_v56  ;;  %v567_v23 = vrot.slane %v472_v9, %v1703_v49  ;;  %v571_v24 = vrot.slane %v472_v9, %v1706_v38 }
  0x98   :  { %v844_v25 = vcombine.low %v822_v17, %v829_v18  ;;  %v575_v26 = vrot.slane %v472_v9, %v1709_v50  ;;  %v579_v27 = vrot.slane %v472_v9, %v1712_v51  ;;  %v583_v28 = vrot.slane %v472_v9, %v1715_v52 }
  0x99   :  { %v1748_v29 = vpop.xlane.xlu1 %494  ;;  %v1750_v30 = vpop.xlane.xlu0 %491  ;;  %v845_v31 = vcombine.low %v836_v21, %v843_v22  ;;  %v587_v32 = vrot.slane %v472_v9, %v1718_v53  ;;  %v861_v33 = vcombine.low %v559_v19, %v563_v20  ;;  %v862_v39 = vcombine.low %v567_v23, %v571_v24 }
  0x9a   :  { %v863_v4 = vcombine.low %v575_v26, %v579_v27  ;;  %v615_v5 = vrot.slane %v481_v54, %v1709_v50  ;;  %v619_v6 = vrot.slane %v481_v54, %v1712_v51  ;;  %v852_v10 = vrot.slane %v844_v25, %v1721_v56 }
  0x9b   :  { %v864_v40 = vcombine.low %v583_v28, %v587_v32  ;;  %v871_v41 = vrot.slane %v861_v33, %v1721_v56  ;;  %v878_v36 = vrot.slane %v862_v39, %v1721_v56  ;;  %v623_v42 = vrot.slane %v481_v54, %v1715_v52 }
  0x9c   :  { %v885_v37 = vrot.slane %v863_v4, %v1721_v56  ;;  %v627_v43 = vrot.slane %v481_v54, %v1718_v53  ;;  %v925_v44 = vcombine.low %v599_v3, %v603_v7  ;;  %v859_v34 = vrot.slane %v845_v31, %v1721_v56 }
  0x9d   :  { %v1761_v45 = vpop.xlane.xlu1 %505  ;;  %v1763_v12 = vpop.xlane.xlu0 %502  ;;  %v892_v46 = vrot.slane %v864_v40, %v1721_v56  ;;  %v893_v55 = vcombine.low %v871_v41, %v878_v36  ;;  %v926_v57 = vcombine.low %v607_v15, %v611_v16  ;;  %v927_v58 = vcombine.low %v615_v5, %v619_v6 }
  0x9e   :  { %v928_v59 = vcombine.low %v623_v42, %v627_v43  ;;  %v935_v60 = vrot.slane %v925_v44, %v1721_v56  ;;  %v631_v61 = vrot.slane %v1733_v8, %v1697_v47  ;;  %v635_v0 = vrot.slane %v1733_v8, %v1700_v48 }
  0x9f   :  { %v894_v62 = vcombine.low %v885_v37, %v892_v46  ;;  %v901_v54 = vrot.slane %v893_v55, %v1721_v56  ;;  %v942_v63 = vrot.slane %v926_v57, %v1721_v56  ;;  %v949_v1 = vrot.slane %v927_v58, %v1721_v56 }
  0xa0   :  { %v956_v2 = vrot.slane %v928_v59, %v1721_v56  ;;  %v639_v3 = vrot.slane %v1733_v8, %v1703_v49  ;;  %v643_v7 = vrot.slane %v1733_v8, %v1706_v38  ;;  %v647_v16 = vrot.slane %v1733_v8, %v1709_v50 }
  0xa1   :  { %v489_v9 = vpop.xlane.xlu1 %488  ;;  %v478_v13 = vpop.xlane.xlu0 %477  ;;  %v908_v14 = vrot.slane %v894_v62, %v1721_v56  ;;  %v957_v15 = vcombine.low %v935_v60, %v942_v63  ;;  %v651_v17 = vrot.slane %v1733_v8, %v1712_v51  ;;  %v860_v22 = vcombine.low %v852_v10, %v859_v34 }
  0xa2   :  { %v663_v18 = vrot.slane %v489_v9, %v1697_v47  ;;  %v667_v19 = vrot.slane %v489_v9, %v1700_v48  ;;  %v591_v20 = vrot.slane %v478_v13, %v1697_v47  ;;  %v595_v21 = vrot.slane %v478_v13, %v1700_v48 }
  0xa3   :  { %v909_v23 = vcombine.low %v901_v54, %v908_v14  ;;  %v958_v24 = vcombine.low %v949_v1, %v956_v2  ;;  %v655_v25 = vrot.slane %v1733_v8, %v1715_v52  ;;  %v659_v28 = vrot.slane %v1733_v8, %v1718_v53 }
  0xa4   :  { %v1023_v26 = vcombine.low %v663_v18, %v667_v19  ;;  %v910_v27 = vcombine.low %v591_v20, %v595_v21  ;;  %v974_v31 = vcombine.low %v631_v61, %v635_v0  ;;  %v965_v32 = vrot.slane %v957_v15, %v1721_v56 }
  0xa5   :  { %v972_v33 = vrot.slane %v958_v24, %v1721_v56  ;;  %v975_v39 = vcombine.low %v639_v3, %v643_v7  ;;  %v976_v4 = vcombine.low %v647_v16, %v651_v17  ;;  %v511_v5 = vpop.xlane.xlu1 %510  ;;  %v977_v40 = vcombine.low %v655_v25, %v659_v28 }
  0xa6   :  { %v1030_v6 = vrot.slane %v1023_v26, %v1721_v56  ;;  %v917_v10 = vrot.slane %v910_v27, %v1721_v56  ;;  %v984_v41 = vrot.slane %v974_v31, %v1721_v56  ;;  %v807_v8 = vrot.slane %v511_v5, %v1697_v47 }
  0xa7   :  { %v991_v36 = vrot.slane %v975_v39, %v1721_v56  ;;  %v998_v37 = vrot.slane %v976_v4, %v1721_v56  ;;  %v671_v42 = vrot.slane %v1750_v30, %v1697_v47  ;;  %v1005_v34 = vrot.slane %v977_v40, %v1721_v56 }
  0xa8   :  { %v1037_v43 = vrot.slane %v1030_v6, %v1721_v56  ;;  %v924_v44 = vrot.slane %v917_v10, %v1721_v56  ;;  %v811_v46 = vrot.slane %v511_v5, %v1700_v48  ;;  %v675_v57 = vrot.slane %v1750_v30, %v1700_v48 }
  0xa9   :  { %v1006_v55 = vcombine.low %v984_v41, %v991_v36  ;;  %v679_v58 = vrot.slane %v1750_v30, %v1703_v49  ;;  %v683_v59 = vrot.slane %v1750_v30, %v1706_v38  ;;  %v1007_v60 = vcombine.low %v998_v37, %v1005_v34 }
  0xaa   :  { %1280 = vperm.xlu0 %1475, %v1037_v43   ;;  %1271 = vperm.xlu1 %1474, %v924_v44   ;;  %v1249_v61 = vcombine.low %v807_v8, %v811_v46  ;;  %v687_v62 = vrot.slane %v1750_v30, %v1709_v50  ;;  %v973_v54 = vcombine.low %v965_v32, %v972_v33  ;;  %v1844_v33 = vpop.xlane.xlu0 %499 }
  0xab   :  { %v691_v63 = vrot.slane %v1750_v30, %v1712_v51  ;;  %v695_v0 = vrot.slane %v1750_v30, %v1715_v52  ;;  %v699_v1 = vrot.slane %v1750_v30, %v1718_v53  ;;  %v1014_v2 = vrot.slane %v1006_v55, %v1721_v56 }
  0xac   :  { %v1021_v3 = vrot.slane %v1007_v60, %v1721_v56  ;;  %v1038_v7 = vcombine.low %v671_v42, %v675_v57  ;;  %v1039_v9 = vcombine.low %v679_v58, %v683_v59  ;;  %v703_v15 = vrot.slane %v1748_v29, %v1697_v47 }
  0xad   :  { %v1040_v13 = vcombine.low %v687_v62, %v691_v63  ;;  %v1041_v14 = vcombine.low %v695_v0, %v699_v1  ;;  %v707_v16 = vrot.slane %v1748_v29, %v1700_v48  ;;  %v1256_v17 = vrot.slane %v1249_v61, %v1721_v56 }
  0xae   :  { %1265 = vperm.xlu0 %1475, %v860_v22   ;;  %1268 = vperm.xlu1 %1474, %v909_v23   ;;  %v1048_v30 = vrot.slane %v1038_v7, %v1721_v56  ;;  %v1055_v18 = vrot.slane %v1039_v9, %v1721_v56  ;;  %v711_v21 = vrot.slane %v1748_v29, %v1703_v49  ;;  %v1498_v62 = vmov 0.0  }
  0xaf   :  { %v1062_v19 = vrot.slane %v1040_v13, %v1721_v56  ;;  %v1069_v20 = vrot.slane %v1041_v14, %v1721_v56  ;;  %v715_v24 = vrot.slane %v1748_v29, %v1706_v38  ;;  %v719_v22 = vrot.slane %v1748_v29, %v1709_v50  ;;  %33 = vst.msk [vmem:[%s2103_s3] sm:$0x1] %vm32_vm1, %v1498_v62 }
  0xb0   :  { %v1070_v25 = vcombine.low %v1048_v30, %v1055_v18  ;;  %v723_v23 = vrot.slane %v1748_v29, %v1712_v51  ;;  %v727_v26 = vrot.slane %v1748_v29, %v1715_v52  ;;  %v731_v28 = vrot.slane %v1748_v29, %v1718_v53  ;;  %34 = vst.msk [vmem:[%s2103_s3 + $0x1] sm:$0x1] %vm32_vm1, %v1498_v62 }
  0xb1   :  { %v1071_v27 = vcombine.low %v1062_v19, %v1069_v20  ;;  %v1087_v31 = vcombine.low %v703_v15, %v707_v16  ;;  %v1088_v32 = vcombine.low %v711_v21, %v715_v24  ;;  %v1022_v39 = vcombine.low %v1014_v2, %v1021_v3  ;;  %35 = vst.msk [vmem:[%s2103_s3 + $0x2] sm:$0x1] %vm32_vm1, %v1498_v62 }
  0xb2   :  { %1274 = vperm.xlu1 %1474, %v973_v54   ;;  %v1078_v4 = vrot.slane %v1070_v25, %v1721_v56  ;;  %v1089_v5 = vcombine.low %v719_v22, %v723_v23  ;;  %v1090_v10 = vcombine.low %v727_v26, %v731_v28  ;;  %v735_v29 = vrot.slane %v1844_v33, %v1697_v47 }
  0xb3   :  { %v1085_v6 = vrot.slane %v1071_v27, %v1721_v56  ;;  %v1097_v40 = vrot.slane %v1087_v31, %v1721_v56  ;;  %v1104_v41 = vrot.slane %v1088_v32, %v1721_v56  ;;  %v1263_v37 = vrot.slane %v1256_v17, %v1721_v56  ;;  %36 = vst.msk [vmem:[%s2103_s3 + $0x3] sm:$0x1] %vm32_vm1, %v1498_v62 }
  0xb4   :  { %v1111_v36 = vrot.slane %v1089_v5, %v1721_v56  ;;  %v743_v8 = vrot.slane %v1763_v12, %v1697_v47  ;;  %v1118_v42 = vrot.slane %v1090_v10, %v1721_v56  ;;  %v739_v44 = vrot.slane %v1844_v33, %v1700_v48  ;;  %19 = vst.msk [vmem:[%s2104_s2] sm:$0xff] %vm18_vm2, %v1498_v62 }
  0xb5   :  { %v1119_v43 = vcombine.low %v1097_v40, %v1104_v41  ;;  %v747_v34 = vrot.slane %v1763_v12, %v1700_v48  ;;  %v1086_v46 = vcombine.low %v1078_v4, %v1085_v6  ;;  %1298 = vperm.xlu0 %1475, %v1263_v37   ;;  %v751_v55 = vrot.slane %v1763_v12, %v1703_v49 }
  0xb6   :  { %1277 = vperm.xlu1 %1474, %v1022_v39   ;;  %v755_v57 = vrot.slane %v1763_v12, %v1706_v38  ;;  %v1120_v58 = vcombine.low %v1111_v36, %v1118_v42  ;;  %v759_v60 = vrot.slane %v1763_v12, %v1709_v50  ;;  %v763_v61 = vrot.slane %v1763_v12, %v1712_v51 }
  0xb7   :  { %v1127_v59 = vrot.slane %v1119_v43, %v1721_v56  ;;  %v767_v54 = vrot.slane %v1763_v12, %v1715_v52  ;;  %v771_v63 = vrot.slane %v1763_v12, %v1718_v53  ;;  %v1151_v0 = vcombine.low %v743_v8, %v747_v34  ;;  %20 = vst.msk [vmem:[%s2104_s2 + $0x8] sm:$0xff] %vm18_vm2, %v1498_v62 }
  0xb8   :  { %v1152_v1 = vcombine.low %v751_v55, %v755_v57  ;;  %v1134_v2 = vrot.slane %v1120_v58, %v1721_v56  ;;  %v1153_v3 = vcombine.low %v759_v60, %v763_v61  ;;  %v775_v7 = vrot.slane %v1761_v45, %v1697_v47  ;;  %23 = vst.msk [vmem:[%s2104_s2 + $0x18] sm:$0xff] %vm18_vm2, %v1498_v62 }
  0xb9   :  { %v779_v9 = vrot.slane %v1761_v45, %v1700_v48  ;;  %v1154_v13 = vcombine.low %v767_v54, %v771_v63  ;;  %v1161_v14 = vrot.slane %v1151_v0, %v1721_v56  ;;  %v783_v12 = vrot.slane %v1761_v45, %v1703_v49  ;;  %24 = vst.msk [vmem:[%s2104_s2 + $0x20] sm:$0xff] %vm18_vm2, %v1498_v62 }
  0xba   :  { %1283 = vperm.xlu1 %1474, %v1086_v46   ;;  %v1168_v15 = vrot.slane %v1152_v1, %v1721_v56  ;;  %v1135_v16 = vcombine.low %v1127_v59, %v1134_v2  ;;  %v1175_v17 = vrot.slane %v1153_v3, %v1721_v56  ;;  %v787_v30 = vrot.slane %v1761_v45, %v1706_v38 }
  0xbb   :  { %v791_v47 = vrot.slane %v1761_v45, %v1709_v50  ;;  %v1182_v48 = vrot.slane %v1154_v13, %v1721_v56  ;;  %v795_v19 = vrot.slane %v1761_v45, %v1712_v51  ;;  %v799_v20 = vrot.slane %v1761_v45, %v1715_v52  ;;  %26 = vst.msk [vmem:[%s2104_s2 + $0x30] sm:$0xff] %vm18_vm2, %v1498_v62  ;;  %v61_v6 = vld [vmem:[%s2104_s2] sm:$0xff] }
  0xbc   :  { %v1183_v18 = vcombine.low %v1161_v14, %v1168_v15  ;;  %v803_v49 = vrot.slane %v1761_v45, %v1718_v53  ;;  %v1200_v21 = vcombine.low %v775_v7, %v779_v9  ;;  %v1201_v24 = vcombine.low %v783_v12, %v787_v30  ;;  %27 = vst.msk [vmem:[%s2104_s2 + $0x38] sm:$0xff] %vm18_vm2, %v1498_v62 }
  0xbd   :  { %v1184_v25 = vcombine.low %v1175_v17, %v1182_v48  ;;  %v1202_v22 = vcombine.low %v791_v47, %v795_v19  ;;  %v1136_v27 = vcombine.low %v735_v29, %v739_v44  ;;  %29 = vst.msk [vmem:[%s2104_s2 + $0x48] sm:$0xff] %vm18_vm2, %v1498_v62  ;;  %30 = vst.msk [vmem:[%s2104_s2 + $0x50] sm:$0xff] %vm18_vm2, %v1498_v62 }
  0xbe   :  { %1286 = vperm.xlu1 %1474, %v1135_v16   ;;  %v1191_v38 = vrot.slane %v1183_v18, %v1721_v56  ;;  %v1203_v50 = vcombine.low %v799_v20, %v803_v49  ;;  %v1210_v23 = vrot.slane %v1200_v21, %v1721_v56  ;;  %v1217_v26 = vrot.slane %v1201_v24, %v1721_v56  ;;  %v62_v42 = vld [vmem:[%s2104_s2 + $0x8] sm:$0xff] }
  0xbf   :  { %v1198_v51 = vrot.slane %v1184_v25, %v1721_v56  ;;  %v1224_v52 = vrot.slane %v1202_v22, %v1721_v56  ;;  %22 = vst.msk [vmem:[%s2104_s2 + $0x10] sm:$0x3] %vm21_vm3, %v1498_v62  ;;  %25 = vst.msk [vmem:[%s2104_s2 + $0x28] sm:$0x3] %vm21_vm3, %v1498_v62  ;;  %v1143_v33 = vrot.slane %v1136_v27, %v1721_v56  ;;  %v64_v10 = vld [vmem:[%s2104_s2 + $0x18] sm:$0xff] }
  0xc0   :  { %v1231_v28 = vrot.slane %v1203_v50, %v1721_v56  ;;  %v1232_v53 = vcombine.low %v1210_v23, %v1217_v26  ;;  %28 = vst.msk [vmem:[%s2104_s2 + $0x40] sm:$0x3] %vm21_vm3, %v1498_v62  ;;  %31 = vst.msk [vmem:[%s2104_s2 + $0x58] sm:$0x3] %vm21_vm3, %v1498_v62  ;;  %v65_v43 = vld [vmem:[%s2104_s2 + $0x20] sm:$0xff] }
  0xc1   :  { %v1199_v45 = vcombine.low %v1191_v38, %v1198_v51  ;;  %v1150_v5 = vrot.slane %v1143_v33, %v1721_v56 }
  0xc2   :  { %v1233_v31 = vcombine.low %v1224_v52, %v1231_v28  ;;  %v1240_v32 = vrot.slane %v1232_v53, %v1721_v56  ;;  %v67_v13 = vld [vmem:[%s2104_s2 + $0x30] sm:$0xff] }
  0xc3   :  { %1292 = vperm.xlu1 %1474, %v1199_v45   ;;  %v68_v48 = vld [vmem:[%s2104_s2 + $0x38] sm:$0xff] }
  0xc4   :  { %v1247_v39 = vrot.slane %v1233_v31, %v1721_v56  ;;  %v70_v14 = vld [vmem:[%s2104_s2 + $0x48] sm:$0xff]  ;;  %v71_v18 = vld [vmem:[%s2104_s2 + $0x50] sm:$0xff] }
  0xc6   :  { %v1248_v4 = vcombine.low %v1240_v32, %v1247_v39  ;;  %v63_v59 = vld [vmem:[%s2104_s2 + $0x10] sm:$0x3]  ;;  %v66_v60 = vld [vmem:[%s2104_s2 + $0x28] sm:$0x3]  ;;  %v1301_v32 = vand.u32 127, %v524_v11 }
  0xc7   :  { %v69_v38 = vld [vmem:[%s2104_s2 + $0x40] sm:$0x3]  ;;  %v72_v22 = vld [vmem:[%s2104_s2 + $0x58] sm:$0x3] }
  0xc8   :  { %1295 = vperm.xlu1 %1474, %v1248_v4   ;;  %v1306_v33 = vadd.s32 4294967288, %v1301_v32  ;;  %v1313_v39 = vadd.s32 4294967280, %v1301_v32 }
  0xcc   :  { %1289 = vperm.xlu1 %1474, %v1150_v5  }
  0xe0   :  { %v153_v40 = vpop.f32.mrf.mxu0 }
  0xe1   :  { %v235_v41 = vpop.f32.mrf.mxu1  ;;  %v413_v36 = vadd.f32 %v153_v40, %v61_v6  ;;  %v1309_v6 = vsub.s32 %v1306_v33, %v1694_v35  ;;  %v1316_v40 = vsub.s32 %v1313_v39, %v1694_v35 }
  0xe2   :  { %v416_v29 = vadd.f32 %v235_v41, %v64_v10  ;;  %v155_v8 = vpop.f32.mrf.mxu0  ;;  %v1304_v10 = vsub.s32 %v1301_v32, %v1694_v35 }
  0xe3   :  { %v237_v37 = vpop.f32.mrf.mxu1  ;;  %426 = vst.msk [vmem:[%s2104_s2] sm:$0xff] %vm18_vm2, %v413_v36 }
  0xe4   :  { %430 = vst.msk [vmem:[%s2104_s2 + $0x18] sm:$0xff] %vm18_vm2, %v416_v29  ;;  %v156_v44 = vpop.f32.mrf.mxu0 }
  0xe5   :  { %v238_v34 = vpop.f32.mrf.mxu1  ;;  %v414_v46 = vadd.f32 %v156_v44, %v62_v42 }
  0xe6   :  { %v417_v55 = vadd.f32 %v238_v34, %v65_v43  ;;  %v158_v58 = vpop.f32.mrf.mxu0  ;;  %v439_v34 = vld [vmem:[%s2103_s3] sm:$0x1] }
  0xe7   :  { %v240_v57 = vpop.f32.mrf.mxu1  ;;  %427 = vst.msk [vmem:[%s2104_s2 + $0x8] sm:$0xff] %vm18_vm2, %v414_v46 }
  0xe8   :  { %431 = vst.msk [vmem:[%s2104_s2 + $0x20] sm:$0xff] %vm18_vm2, %v417_v55  ;;  %v161_v61 = vpop.f32.mrf.mxu0 }
  0xe9   :  { %v243_v62 = vpop.f32.mrf.mxu1  ;;  %v415_v54 = vadd.f32 %v161_v61, %v63_v59 }
  0xea   :  { %v418_v63 = vadd.f32 %v243_v62, %v66_v60  ;;  %v163_v1 = vpop.f32.mrf.mxu0 }
  0xeb   :  { %v245_v0 = vpop.f32.mrf.mxu1  ;;  %429 = vst.msk [vmem:[%s2104_s2 + $0x10] sm:$0x3] %vm21_vm3, %v415_v54 }
  0xec   :  { %432 = vst.msk [vmem:[%s2104_s2 + $0x28] sm:$0x3] %vm21_vm3, %v418_v63  ;;  %v164_v2 = vpop.f32.mrf.mxu0  ;;  %v440_v63 = vld [vmem:[%s2103_s3 + $0x1] sm:$0x1] }
  0xed   :  { %v246_v3 = vpop.f32.mrf.mxu1 }
  0xee   :  { %v165_v9 = vpop.f32.mrf.mxu0 }
  0xef   :  { %v247_v7 = vpop.f32.mrf.mxu1 }
  0xf0   :  { %v317_v15 = vpop.f32.mrf.mxu0 }
  0xf1   :  { %v399_v12 = vpop.f32.mrf.mxu1  ;;  %v419_v16 = vadd.f32 %v317_v15, %v67_v13 }
  0xf2   :  { %v422_v17 = vadd.f32 %v399_v12, %v70_v14  ;;  %v319_v47 = vpop.f32.mrf.mxu0 }
  0xf3   :  { %v401_v30 = vpop.f32.mrf.mxu1  ;;  %433 = vst.msk [vmem:[%s2104_s2 + $0x30] sm:$0xff] %vm18_vm2, %v419_v16 }
  0xf4   :  { %436 = vst.msk [vmem:[%s2104_s2 + $0x48] sm:$0xff] %vm18_vm2, %v422_v17  ;;  %v320_v19 = vpop.f32.mrf.mxu0 }
  0xf5   :  { %v402_v20 = vpop.f32.mrf.mxu1  ;;  %v420_v49 = vadd.f32 %v320_v19, %v68_v48 }
  0xf6   :  { %v423_v21 = vadd.f32 %v402_v20, %v71_v18  ;;  %v322_v25 = vpop.f32.mrf.mxu0  ;;  %v442_v20 = vld [vmem:[%s2103_s3 + $0x3] sm:$0x1] }
  0xf7   :  { %v404_v24 = vpop.f32.mrf.mxu1  ;;  %434 = vst.msk [vmem:[%s2104_s2 + $0x38] sm:$0xff] %vm18_vm2, %v420_v49 }
  0xf8   :  { %437 = vst.msk [vmem:[%s2104_s2 + $0x50] sm:$0xff] %vm18_vm2, %v423_v21  ;;  %v325_v50 = vpop.f32.mrf.mxu0 }
  0xf9   :  { %v407_v23 = vpop.f32.mrf.mxu1  ;;  %v421_v26 = vadd.f32 %v325_v50, %v69_v38  ;;  %v441_v38 = vld [vmem:[%s2103_s3 + $0x2] sm:$0x1] }
  0xfa   :  { %v424_v27 = vadd.f32 %v407_v23, %v72_v22  ;;  %v327_v52 = vpop.f32.mrf.mxu0 }
  0xfb   :  { %v409_v51 = vpop.f32.mrf.mxu1  ;;  %435 = vst.msk [vmem:[%s2104_s2 + $0x40] sm:$0x3] %vm21_vm3, %v421_v26 }
  0xfc   :  { %438 = vst.msk [vmem:[%s2104_s2 + $0x58] sm:$0x3] %vm21_vm3, %v424_v27  ;;  %v328_v28 = vpop.f32.mrf.mxu0 }
  0xfd   :  { %v410_v53 = vpop.f32.mrf.mxu1 }
  0xfe   :  { %v329_v45 = vpop.f32.mrf.mxu0 }
  0xff   :  { %v411_v31 = vpop.f32.mrf.mxu1 }
 0x125   :  { %v1272_v4 = vpop.permute.xlu1 %1271  ;;  %v1281_v5 = vpop.permute.xlu0 %1280 }
 0x126   :  { %v1317_v8 = vrot.slane %v1272_v4, %v1316_v40  ;;  %v1332_v46 = vrot.slane %v1281_v5, %v1316_v40 }
 0x129   :  { %v1269_v41 = vpop.permute.xlu1 %1268  ;;  %v1266_v36 = vpop.permute.xlu0 %1265 }
 0x12a   :  { %v1310_v29 = vrot.slane %v1269_v41, %v1309_v6  ;;  %v1305_v37 = vrot.slane %v1266_v36, %v1304_v10 }
 0x12c   :  { %v1312_v42 = vsel %vm1311_vm4, %v1310_v29, %v1305_v37 }
 0x12d   :  { %v1319_v11 = vsel %vm1318_vm5, %v1317_v8, %v1312_v42  ;;  %v1275_v43 = vpop.permute.xlu1 %1274 }
 0x12e   :  { %v1368_v44 = vrot.slane %v1319_v11, %v1721_v56  ;;  %v1323_v58 = vrot.slane %v1275_v43, %v1304_v10 }
 0x130   :  { %v1375_v35 = vrot.slane %v1368_v44, %v1721_v56  ;;  %v1299_v7 = vpop.permute.xlu0 %1298 }
 0x131   :  { %v1278_v55 = vpop.permute.xlu1 %1277  ;;  %v1360_v12 = vrot.slane %v1299_v7, %v1316_v40 }
 0x132   :  { %v1422_v57 = vadd.f32 %v1375_v35, %v439_v34  ;;  %v1327_v59 = vrot.slane %v1278_v55, %v1309_v6 }
 0x134   :  { %1427 = vst.msk [vmem:[%s2103_s3] sm:$0x1] %vm32_vm1, %v1422_v57  ;;  %v1328_v60 = vsel %vm1311_vm4, %v1327_v59, %v1323_v58 }
 0x135   :  { %v1333_v61 = vsel %vm1318_vm5, %v1332_v46, %v1328_v60  ;;  %v1284_v62 = vpop.permute.xlu1 %1283 }
 0x136   :  { %v1382_v54 = vrot.slane %v1333_v61, %v1721_v56  ;;  %v1337_v17 = vrot.slane %v1284_v62, %v1304_v10 }
 0x138   :  { %v1389_v0 = vrot.slane %v1382_v54, %v1721_v56 }
 0x139   :  { %v1287_v1 = vpop.permute.xlu1 %1286 }
 0x13a   :  { %v1423_v2 = vadd.f32 %v1389_v0, %v440_v63  ;;  %v1341_v15 = vrot.slane %v1287_v1, %v1309_v6 }
 0x13c   :  { %1428 = vst.msk [vmem:[%s2103_s3 + $0x1] sm:$0x1] %vm32_vm1, %v1423_v2  ;;  %v1342_v19 = vsel %vm1311_vm4, %v1341_v15, %v1337_v17 }
 0x13e   :  { %v1293_v3 = vpop.permute.xlu1 %1292 }
 0x13f   :  { %v1351_v13 = vrot.slane %v1293_v3, %v1304_v10 }
 0x143   :  { %v1296_v9 = vpop.permute.xlu1 %1295 }
 0x144   :  { %v1355_v14 = vrot.slane %v1296_v9, %v1309_v6 }
 0x146   :  { %v1356_v16 = vsel %vm1311_vm4, %v1355_v14, %v1351_v13 }
 0x147   :  { %v1361_v30 = vsel %vm1318_vm5, %v1360_v12, %v1356_v16  ;;  %v1290_v47 = vpop.permute.xlu1 %1289 }
 0x148   :  { %v1410_v48 = vrot.slane %v1361_v30, %v1721_v56  ;;  %v1346_v18 = vrot.slane %v1290_v47, %v1316_v40 }
 0x14a   :  { %v1417_v49 = vrot.slane %v1410_v48, %v1721_v56  ;;  %v1347_v21 = vsel %vm1318_vm5, %v1346_v18, %v1342_v19 }
 0x14b   :  { %v1396_v24 = vrot.slane %v1347_v21, %v1721_v56 }
 0x14c   :  { %v1425_v25 = vadd.f32 %v1417_v49, %v442_v20 }
 0x14d   :  { %v1403_v22 = vrot.slane %v1396_v24, %v1721_v56 }
 0x14e   :  { %1430 = vst.msk [vmem:[%s2103_s3 + $0x3] sm:$0x1] %vm32_vm1, %v1425_v25 }
 0x14f   :  { %v1424_v50 = vadd.f32 %v1403_v22, %v441_v38 }
 0x151   :  { %1429 = vst.msk [vmem:[%s2103_s3 + $0x2] sm:$0x1] %vm32_vm1, %v1424_v50 }

// kernel: _lambda_.6
= control target key start
LH: loop header
LB: loop body
LE: loop exit
PB: predicated region body
PF: predicated region fallthrough
CT: control target
= control target key end

     0   :  { %v858_v3 = vmov 0   ;;  %vm105_vm0 = vcmask 1040384   ;;  %vm98_vm1 = vcmask 146432   ;;  %s1147_s1 = inlined_call_operand.vmem [shape: f32[4,18,18], index: 1, kind: input, shape index: {}]   ;;  %s1148_s0 = inlined_call_operand.vmem [shape: bf16[4,18,256], index: 0, kind: input, shape index: {}]   ;;  %s1149_s2 = inlined_call_operand.vmem [shape: f32[4,1,18], index: 2, kind: input, shape index: {}]   ;;  %s1150_s3 = inlined_call_operand.vmem [shape: bf16[4,18,256], index: 3, kind: output, shape index: {}]  }
   0x1   :  { %v42_v0 = vld [vmem:[%s1147_s1 + $0x18] sm:$0xff]  ;;  %v43_v1 = vld [vmem:[%s1147_s1 + $0x20] sm:$0xff]  ;;  %144 = vmatprep.mubr.bf16.mxu0 %v858_v3  ;;  %238 = vmatprep.mubr.bf16.mxu1 %v858_v3  ;;  %v40_v5 = vld [vmem:[%s1147_s1 + $0x8] sm:$0xff] }
   0x2   :  { %v39_v2 = vld [vmem:[%s1147_s1] sm:$0xff]  ;;  %v53_v4 = vpack.c.bf16 %v43_v1, %v42_v0  ;;  %v44_v6 = vld [vmem:[%s1147_s1 + $0x28] sm:$0x3]  ;;  %v41_v7 = vld [vmem:[%s1147_s1 + $0x10] sm:$0x3] }
   0x3   :  { %v51_v8 = vpack.c.bf16 %v40_v5, %v39_v2  ;;  %v48_v9 = vld [vmem:[%s1147_s1 + $0x48] sm:$0xff]  ;;  %v54_v10 = vpack.c.bf16 %v44_v6, %v44_v6  ;;  %v49_v11 = vld [vmem:[%s1147_s1 + $0x50] sm:$0xff]  ;;  %v46_v13 = vld [vmem:[%s1147_s1 + $0x38] sm:$0xff]  ;;  %v52_v14 = vpack.c.bf16 %v41_v7, %v41_v7 }
   0x4   :  { %163 = vxpose.xlu1.c.b16.start [1/2] (short) (narrow) %v53_v4, 32  ;;  %v45_v12 = vld [vmem:[%s1147_s1 + $0x30] sm:$0xff]  ;;  %v20_v16 = vld [vmem:[%s1148_s0 + $0x28] sm:$0x11]  ;;  %v15_v17 = vld [vmem:[%s1148_s0] sm:$0xff]  ;;  %v57_v24 = vpack.c.bf16 %v49_v11, %v48_v9 }
   0x5   :  { %67 = vxpose.xlu0.c.b16.start [1/2] (short) (narrow) %v51_v8, 32  ;;  %v17_v15 = vld [vmem:[%s1148_s0 + $0x10] sm:$0x11]  ;;  %v32_v19 = vmax.bf16 %v858_v3, %v20_v16  ;;  %v16_v20 = vld [vmem:[%s1148_s0 + $0x8] sm:$0xff]  ;;  %v27_v21 = vmax.bf16 %v858_v3, %v15_v17  ;;  %v18_v22 = vld [vmem:[%s1148_s0 + $0x18] sm:$0xff]  ;;  %v55_v34 = vpack.c.bf16 %v46_v13, %v45_v12 }
   0x6   :  { %v29_v18 = vmax.bf16 %v858_v3, %v17_v15  ;;  %v19_v23 = vld [vmem:[%s1148_s0 + $0x20] sm:$0xff]  ;;  %v28_v25 = vmax.bf16 %v858_v3, %v16_v20  ;;  %v30_v26 = vmax.bf16 %v858_v3, %v18_v22  ;;  %v26_v29 = vld [vmem:[%s1148_s0 + $0x58] sm:$0x11]  ;;  %v21_v49 = vld [vmem:[%s1148_s0 + $0x30] sm:$0xff] }
   0x7   :  { %v31_v27 = vmax.bf16 %v858_v3, %v19_v23  ;;  %v23_v28 = vld [vmem:[%s1148_s0 + $0x40] sm:$0x11]  ;;  %v943_v31 = vcombine.high %v32_v19, %v32_v19  ;;  %v790_v33 = vcombine.low %v32_v19, %v32_v19  ;;  %v50_v35 = vld [vmem:[%s1147_s1 + $0x58] sm:$0x3]  ;;  %v38_v42 = vmax.bf16 %v858_v3, %v26_v29  ;;  %v24_v51 = vld [vmem:[%s1148_s0 + $0x48] sm:$0xff] }
   0x8   :  { %164 = vxpose.xlu1.c.b16.end [2/2] (short) (narrow) %v54_v10, 32  ;;  %v941_v30 = vcombine.high %v29_v18, %v29_v18  ;;  %v783_v32 = vcombine.low %v29_v18, %v29_v18  ;;  %v948_v36 = vcombine.high %v27_v21, %v28_v25  ;;  %v47_v38 = vld [vmem:[%s1147_s1 + $0x40] sm:$0x3]  ;;  %v35_v41 = vmax.bf16 %v858_v3, %v23_v28  ;;  %v22_v50 = vld [vmem:[%s1148_s0 + $0x38] sm:$0xff]  ;;  %v25_v52 = vld [vmem:[%s1148_s0 + $0x50] sm:$0xff] }
   0x9   :  { %68 = vxpose.xlu0.c.b16.end [2/2] (short) (narrow) %v52_v14, 32  ;;  %v950_v37 = vcombine.high %v30_v26, %v31_v27  ;;  %792 = vmatprep.subr.msk.bf16.mxu1 %vm105_vm0, %v943_v31  ;;  %v201_v40 = vsel %vm105_vm0, %v790_v33, 0  ;;  %v966_v43 = vcombine.low %v27_v21, %v28_v25  ;;  %v788_v44 = vcombine.low %v30_v26, %v31_v27  ;;  %v60_v10 = vld [vmem:[%s1149_s2 + $0x1] sm:$0x1]  ;;  %v59_v11 = vld [vmem:[%s1149_s2] sm:$0x1] }
   0xa   :  { %785 = vmatprep.subr.msk.bf16.mxu0 %vm105_vm0, %v941_v30  ;;  %v960_v39 = vsel %vm105_vm0, %v783_v32, 0  ;;  %219 = vmatpush1.bf16.msra.mxu1 %v201_v40  ;;  %v58_v45 = vpack.c.bf16 %v50_v35, %v50_v35  ;;  %v969_v46 = vcombine.high %v35_v41, %v35_v41  ;;  %v56_v47 = vpack.c.bf16 %v47_v38, %v47_v38  ;;  %v62_v14 = vld [vmem:[%s1149_s2 + $0x3] sm:$0x1]  ;;  %v61_v15 = vld [vmem:[%s1149_s2 + $0x2] sm:$0x1] }
   0xb   :  { %125 = vmatpush1.bf16.msra.mxu0 %v960_v39  ;;  %220 = vmatprep.subr.bf16.mxu1 %v950_v37  ;;  %v805_v48 = vcombine.high %v38_v42, %v38_v42  ;;  %v804_v53 = vcombine.low %v38_v42, %v38_v42  ;;  %v797_v54 = vcombine.low %v35_v41, %v35_v41 }
   0xc   :  { %351 = vxpose.xlu1.c.b16.start [1/2] (short) (narrow) %v57_v24, 32  ;;  %126 = vmatprep.subr.bf16.mxu0 %v948_v36  ;;  %v33_v55 = vmax.bf16 %v858_v3, %v21_v49  ;;  %v34_v56 = vmax.bf16 %v858_v3, %v22_v50  ;;  %v36_v57 = vmax.bf16 %v858_v3, %v24_v51 }
   0xd   :  { %257 = vxpose.xlu0.c.b16.start [1/2] (short) (narrow) %v55_v34, 32  ;;  %v37_v58 = vmax.bf16 %v858_v3, %v25_v52  ;;  %v389_v59 = vsel %vm105_vm0, %v804_v53, 0  ;;  %v295_v61 = vsel %vm105_vm0, %v797_v54, 0  ;;  %v64_v12 = vpack.c.bf16 %v60_v10, %v60_v10 }
   0xe   :  { %221 = vmatpush1.bf16.msra.mxu1 %v788_v44  ;;  %v796_v62 = vcombine.high %v33_v55, %v34_v56  ;;  %v795_v2 = vcombine.low %v33_v55, %v34_v56  ;;  %v63_v13 = vpack.c.bf16 %v59_v11, %v59_v11  ;;  %v66_v16 = vpack.c.bf16 %v62_v14, %v62_v14 }
   0xf   :  { %127 = vmatpush1.bf16.msra.mxu0 %v966_v43  ;;  %806 = vmatprep.subr.msk.bf16.mxu1 %vm105_vm0, %v805_v48  ;;  %v803_v0 = vcombine.high %v36_v57, %v37_v58  ;;  %v802_v1 = vcombine.low %v36_v57, %v37_v58  ;;  %v65_v17 = vpack.c.bf16 %v61_v15, %v61_v15  ;;  %v629_v58 = vlaneseq }
  0x10   :  { %352 = vxpose.xlu1.c.b16.end [2/2] (short) (narrow) %v58_v45, 32  ;;  %799 = vmatprep.subr.msk.bf16.mxu0 %vm105_vm0, %v969_v46 }
  0x11   :  { %258 = vxpose.xlu0.c.b16.end [2/2] (short) (narrow) %v56_v47, 32 }
  0x66   :  { %v171_v60 = vpop.trf.xlu1 }
  0x67   :  { %v75_v63 = vpop.trf.xlu0  ;;  %793 = vmatmul.mubr.msk.bf16.vlgmr.msra.gmra.mxu1 %vm98_vm1, %v171_v60 }
  0x68   :  { %786 = vmatmul.mubr.msk.bf16.vlgmr.msra.gmra.mxu0 %vm98_vm1, %v75_v63  ;;  %407 = vmatpush1.bf16.msra.mxu1 %v389_v59  ;;  %v630_v63 = vshrl.u32 %v629_v58, 7 }
  0x69   :  { %313 = vmatpush1.bf16.msra.mxu0 %v295_v61  ;;  %154 = vmatprep.mubr.bf16.mxu0 %v858_v3 }
  0x6a   :  { %248 = vmatprep.mubr.bf16.mxu1 %v858_v3  ;;  %314 = vmatprep.subr.bf16.mxu0 %v796_v62  ;;  %v172_v4 = vpop.trf.xlu1 }
  0x6b   :  { %408 = vmatprep.subr.bf16.mxu1 %v803_v0  ;;  %v76_v5 = vpop.trf.xlu0 }
  0x6c   :  { %409 = vmatpush1.bf16.msra.mxu1 %v802_v1 }
  0x6d   :  { %315 = vmatpush1.bf16.msra.mxu0 %v795_v2  ;;  %811 = vmatprep.subr.msk.bf16.mxu1 %vm105_vm0, %v943_v31 }
  0x6e   :  { %809 = vmatprep.subr.msk.bf16.mxu0 %vm105_vm0, %v941_v30  ;;  %v359_v6 = vpop.trf.xlu1 }
  0x6f   :  { %794 = vmatmul.mubr.msk.bf16.gmra.mxu1 %vm98_vm1, %v172_v4  ;;  %v265_v7 = vpop.trf.xlu0 }
  0x70   :  { %787 = vmatmul.mubr.msk.bf16.gmra.mxu0 %vm98_vm1, %v76_v5  ;;  %426 = vmatprep.mubr.bf16.mxu1 %v858_v3 }
  0x71   :  { %332 = vmatprep.mubr.bf16.mxu0 %v858_v3 }
  0x72   :  { %v360_v8 = vpop.trf.xlu1 }
  0x73   :  { %v266_v9 = vpop.trf.xlu0 }
  0x77   :  { %807 = vmatmul.mubr.msk.bf16.vlgmr.msra.gmra.mxu1 %vm98_vm1, %v359_v6 }
  0x78   :  { %800 = vmatmul.mubr.msk.bf16.vlgmr.msra.gmra.mxu0 %vm98_vm1, %v265_v7  ;;  %505 = vmatpush1.bf16.msra.mxu1 %v201_v40 }
  0x79   :  { %461 = vmatpush1.bf16.msra.mxu0 %v960_v39  ;;  %342 = vmatprep.mubr.bf16.mxu0 %v858_v3 }
  0x7a   :  { %436 = vmatprep.mubr.bf16.mxu1 %v858_v3  ;;  %462 = vmatprep.subr.bf16.mxu0 %v948_v36 }
  0x7b   :  { %506 = vmatprep.subr.bf16.mxu1 %v950_v37 }
  0x7c   :  { %507 = vmatpush1.bf16.msra.mxu1 %v788_v44 }
  0x7d   :  { %463 = vmatpush1.bf16.msra.mxu0 %v966_v43  ;;  %815 = vmatprep.subr.msk.bf16.mxu1 %vm105_vm0, %v805_v48 }
  0x7e   :  { %813 = vmatprep.subr.msk.bf16.mxu0 %vm105_vm0, %v969_v46 }
  0x7f   :  { %808 = vmatmul.mubr.msk.bf16.gmra.mxu1 %vm98_vm1, %v360_v8 }
  0x80   :  { %801 = vmatmul.mubr.msk.bf16.gmra.mxu0 %vm98_vm1, %v266_v9  ;;  %524 = vmatprep.mubr.bf16.mxu1 %v858_v3  ;;  %v631_v9 = vsub.s32 0, %v630_v63 }
  0x81   :  { %480 = vmatprep.mubr.bf16.mxu0 %v858_v3 }
  0x87   :  { %812 = vmatmul.mubr.msk.bf16.vlgmr.msra.gmra.mxu1 %vm98_vm1, %v64_v12 }
  0x88   :  { %810 = vmatmul.mubr.msk.bf16.vlgmr.msra.gmra.mxu0 %vm98_vm1, %v63_v13  ;;  %593 = vmatpush1.bf16.msra.mxu1 %v389_v59 }
  0x89   :  { %549 = vmatpush1.bf16.msra.mxu0 %v295_v61  ;;  %594 = vmatprep.subr.bf16.mxu1 %v803_v0 }
  0x8a   :  { %550 = vmatprep.subr.bf16.mxu0 %v796_v62  ;;  %568 = vmatprep.mubr.bf16.mxu0 %v858_v3 }
  0x8b   :  { %612 = vmatprep.mubr.bf16.mxu1 %v858_v3 }
  0x8c   :  { %595 = vmatpush1.bf16.msra.mxu1 %v802_v1 }
  0x8d   :  { %551 = vmatpush1.bf16.msra.mxu0 %v795_v2 }
  0x8f   :  { %816 = vmatmul.mubr.msk.bf16.vlgmr.msra.gmra.mxu1 %vm98_vm1, %v66_v16 }
  0x90   :  { %814 = vmatmul.mubr.msk.bf16.vlgmr.msra.gmra.mxu0 %vm98_vm1, %v65_v17 }
 0x127   :  { %v1039_v18 = vpop.f32.mrf.mxu1 }
 0x128   :  { %v1041_v19 = vpop.f32.mrf.mxu0 }
 0x129   :  { %v1043_v20 = vpop.f32.mrf.mxu1 }
 0x12a   :  { %v1045_v21 = vpop.f32.mrf.mxu0 }
 0x12b   :  { %v1047_v22 = vpop.f32.mrf.mxu1 }
 0x12c   :  { %v1049_v23 = vpop.f32.mrf.mxu0 }
 0x12d   :  { %v1051_v3 = vpop.f32.mrf.mxu1 }
 0x12e   :  { %v1053_v24 = vpop.f32.mrf.mxu0 }
 0x12f   :  { %v1055_v25 = vpop.f32.mrf.mxu1 }
 0x130   :  { %v1057_v26 = vpop.f32.mrf.mxu0 }
 0x131   :  { %v1059_v27 = vpop.f32.mrf.mxu1 }
 0x132   :  { %v1061_v28 = vpop.f32.mrf.mxu0 }
 0x133   :  { %v254_v29 = vpop.f32.mrf.mxu1 }
 0x134   :  { %v160_v30 = vpop.f32.mrf.mxu0 }
 0x135   :  { %v255_v31 = vpop.f32.mrf.mxu1 }
 0x136   :  { %v161_v32 = vpop.f32.mrf.mxu0 }
 0x137   :  { %v1063_v33 = vpop.f32.mrf.mxu1 }
 0x138   :  { %v1065_v34 = vpop.f32.mrf.mxu0 }
 0x139   :  { %v1067_v35 = vpop.f32.mrf.mxu1 }
 0x13a   :  { %v1069_v36 = vpop.f32.mrf.mxu0 }
 0x13b   :  { %v1071_v37 = vpop.f32.mrf.mxu1 }
 0x13c   :  { %v1073_v38 = vpop.f32.mrf.mxu0 }
 0x13d   :  { %v1075_v39 = vpop.f32.mrf.mxu1 }
 0x13e   :  { %v1077_v40 = vpop.f32.mrf.mxu0 }
 0x13f   :  { %v1079_v41 = vpop.f32.mrf.mxu1 }
 0x140   :  { %v1081_v42 = vpop.f32.mrf.mxu0 }
 0x141   :  { %v1083_v43 = vpop.f32.mrf.mxu1 }
 0x142   :  { %v1085_v44 = vpop.f32.mrf.mxu0 }
 0x143   :  { %v442_v45 = vpop.f32.mrf.mxu1 }
 0x144   :  { %v348_v46 = vpop.f32.mrf.mxu0 }
 0x145   :  { %v443_v47 = vpop.f32.mrf.mxu1 }
 0x146   :  { %v349_v48 = vpop.f32.mrf.mxu0 }
 0x147   :  { %v526_v49 = vpop.f32.mrf.mxu1 }
 0x148   :  { %v482_v50 = vpop.f32.mrf.mxu0  ;;  %v527_v51 = vadd.f32 1e-06, %v526_v49 }
 0x149   :  { %v483_v52 = vadd.f32 1e-06, %v482_v50  ;;  %v528_v53 = vpop.f32.mrf.mxu1 }
 0x14a   :  { %842 = vrcp.f32 %v527_v51  ;;  %v484_v54 = vpop.f32.mrf.mxu0  ;;  %v529_v55 = vadd.f32 1e-06, %v528_v53 }
 0x14b   :  { %844 = vrcp.f32 %v483_v52  ;;  %v485_v56 = vadd.f32 1e-06, %v484_v54  ;;  %v530_v57 = vpop.f32.mrf.mxu1 }
 0x14c   :  { %846 = vrcp.f32 %v529_v55  ;;  %v486_v59 = vpop.f32.mrf.mxu0 }
 0x14d   :  { %848 = vrcp.f32 %v485_v56  ;;  %v531_v60 = vpop.f32.mrf.mxu1 }
 0x14e   :  { %v487_v61 = vpop.f32.mrf.mxu0 }
 0x14f   :  { %v614_v62 = vpop.f32.mrf.mxu1 }
 0x150   :  { %v570_v0 = vpop.f32.mrf.mxu0  ;;  %v615_v1 = vadd.f32 1e-06, %v614_v62 }
 0x151   :  { %v571_v2 = vadd.f32 1e-06, %v570_v0  ;;  %v616_v4 = vpop.f32.mrf.mxu1 }
 0x152   :  { %850 = vrcp.f32 %v615_v1  ;;  %v572_v5 = vpop.f32.mrf.mxu0  ;;  %v617_v6 = vadd.f32 1e-06, %v616_v4 }
 0x153   :  { %852 = vrcp.f32 %v571_v2  ;;  %v573_v7 = vadd.f32 1e-06, %v572_v5  ;;  %v618_v8 = vpop.f32.mrf.mxu1 }
 0x154   :  { %854 = vrcp.f32 %v617_v6  ;;  %v574_v10 = vpop.f32.mrf.mxu0 }
 0x155   :  { %856 = vrcp.f32 %v573_v7  ;;  %v619_v11 = vpop.f32.mrf.mxu1 }
 0x156   :  { %v575_v12 = vpop.f32.mrf.mxu0 }
 0x157   :  { %v843_v13 = vpop.eup %842 }
 0x158   :  { %v845_v14 = vpop.eup %844  ;;  %v640_v15 = vrot.slane %v843_v13, %v631_v9 }
 0x159   :  { %v847_v16 = vpop.eup %846  ;;  %v632_v17 = vrot.slane %v845_v14, %v631_v9 }
 0x15a   :  { %v849_v29 = vpop.eup %848  ;;  %v667_v30 = vmul.f32 %v640_v15, %v1039_v18  ;;  %v644_v31 = vrot.slane %v847_v16, %v631_v9  ;;  %v669_v45 = vmul.f32 %v640_v15, %v1047_v22  ;;  %v671_v46 = vmul.f32 %v640_v15, %v1055_v25 }
 0x15b   :  { %v661_v32 = vmul.f32 %v632_v17, %v1041_v19  ;;  %v636_v47 = vrot.slane %v849_v29, %v631_v9  ;;  %v663_v48 = vmul.f32 %v632_v17, %v1049_v23  ;;  %v665_v52 = vmul.f32 %v632_v17, %v1057_v26 }
 0x15c   :  { %v668_v49 = vmul.f32 %v644_v31, %v1043_v20  ;;  %v670_v50 = vmul.f32 %v644_v31, %v1051_v3  ;;  %v672_v51 = vmul.f32 %v644_v31, %v1059_v27 }
 0x15d   :  { %v662_v18 = vmul.f32 %v636_v47, %v1045_v21  ;;  %v664_v53 = vmul.f32 %v636_v47, %v1053_v24  ;;  %v666_v19 = vmul.f32 %v636_v47, %v1061_v28 }
 0x15e   :  { %v832_v22 = vpack.c.bf16 %v668_v49, %v667_v30  ;;  %v833_v54 = vpack.c.bf16 %v670_v50, %v669_v45  ;;  %v834_v25 = vpack.c.bf16 %v672_v51, %v671_v46 }
 0x15f   :  { %v851_v55 = vpop.eup %850  ;;  %v829_v56 = vpack.c.bf16 %v662_v18, %v661_v32  ;;  %v830_v23 = vpack.c.bf16 %v664_v53, %v663_v48  ;;  %v831_v57 = vpack.c.bf16 %v666_v19, %v665_v52 }
 0x160   :  { %v853_v20 = vpop.eup %852  ;;  %768 = vst [vmem:[%s1150_s3 + $0x18] sm:$0xff] %v832_v22  ;;  %769 = vst [vmem:[%s1150_s3 + $0x20] sm:$0xff] %v833_v54  ;;  %v656_v21 = vrot.slane %v851_v55, %v631_v9 }
 0x161   :  { %770 = vst [vmem:[%s1150_s3 + $0x28] sm:$0x11] %v834_v25  ;;  %v855_v3 = vpop.eup %854  ;;  %765 = vst [vmem:[%s1150_s3] sm:$0xff] %v829_v56  ;;  %v648_v24 = vrot.slane %v853_v20, %v631_v9 }
 0x162   :  { %766 = vst [vmem:[%s1150_s3 + $0x8] sm:$0xff] %v830_v23  ;;  %767 = vst [vmem:[%s1150_s3 + $0x10] sm:$0x11] %v831_v57  ;;  %v857_v26 = vpop.eup %856  ;;  %v679_v27 = vmul.f32 %v656_v21, %v1063_v33  ;;  %v660_v28 = vrot.slane %v855_v3, %v631_v9  ;;  %v681_v59 = vmul.f32 %v656_v21, %v1071_v37 }
 0x163   :  { %v673_v58 = vmul.f32 %v648_v24, %v1065_v34  ;;  %v683_v60 = vmul.f32 %v656_v21, %v1079_v41  ;;  %v652_v61 = vrot.slane %v857_v26, %v631_v9  ;;  %v675_v62 = vmul.f32 %v648_v24, %v1073_v38 }
 0x164   :  { %v680_v63 = vmul.f32 %v660_v28, %v1067_v35  ;;  %v682_v0 = vmul.f32 %v660_v28, %v1075_v39  ;;  %v684_v1 = vmul.f32 %v660_v28, %v1083_v43  ;;  %v677_v2 = vmul.f32 %v648_v24, %v1081_v42 }
 0x165   :  { %v674_v33 = vmul.f32 %v652_v61, %v1069_v36  ;;  %v676_v4 = vmul.f32 %v652_v61, %v1077_v40  ;;  %v678_v34 = vmul.f32 %v652_v61, %v1085_v44 }
 0x166   :  { %v838_v37 = vpack.c.bf16 %v680_v63, %v679_v27  ;;  %v839_v5 = vpack.c.bf16 %v682_v0, %v681_v59  ;;  %v840_v41 = vpack.c.bf16 %v684_v1, %v683_v60 }
 0x167   :  { %v835_v6 = vpack.c.bf16 %v674_v33, %v673_v58  ;;  %v836_v7 = vpack.c.bf16 %v676_v4, %v675_v62  ;;  %v837_v38 = vpack.c.bf16 %v678_v34, %v677_v2 }
 0x168   :  { %774 = vst [vmem:[%s1150_s3 + $0x48] sm:$0xff] %v838_v37  ;;  %775 = vst [vmem:[%s1150_s3 + $0x50] sm:$0xff] %v839_v5 }
 0x169   :  { %776 = vst [vmem:[%s1150_s3 + $0x58] sm:$0x11] %v840_v41  ;;  %771 = vst [vmem:[%s1150_s3 + $0x30] sm:$0xff] %v835_v6 }
 0x16a   :  { %772 = vst [vmem:[%s1150_s3 + $0x38] sm:$0xff] %v836_v7  ;;  %773 = vst [vmem:[%s1150_s3 + $0x40] sm:$0x11] %v837_v38 }

// kernel: _lambda_.7
= control target key start
LH: loop header
LB: loop body
LE: loop exit
PB: predicated region body
PF: predicated region fallthrough
CT: control target
= control target key end

     0   :  { %s1407_s18 = smov 0   ;;  %s1826_s0 = inlined_call_operand.vmem [shape: bf16[2,4,9,256], index: 0, kind: input, shape index: {}]   ;;  %s1827_s1 = inlined_call_operand.vmem [shape: f32[1,256], index: 1, kind: input, shape index: {}]   ;;  %s1828_s2 = inlined_call_operand.vmem [shape: s32[1,256], index: 2, kind: input, shape index: {}]   ;;  %s1829_s3 = inlined_call_operand.vmem [shape: bf16[9,4,4], index: 3, kind: input, shape index: {}]   ;;  %s1830_s4 = inlined_call_operand.vmem [shape: f32[4,1], index: 4, kind: input, shape index: {}]   ;;  %s1831_s5 = inlined_call_operand.vmem [shape: f32[2,4,256], index: 5, kind: output, shape index: {}]  }
   0x1 LB: > { %s1263_s19 = sadd.s32 4294967295, %s1366_s18   ;;  %p1267_p0 = scmp.ge.s32.totalorder %s1366_s18, 1  ;;  %s1366_s18 = sphi %s1407_s18, %s15_s18  }
   0x2   : > { %p187_p1 = scmp.lt.s32.totalorder %s1366_s18, 3 }
   0x4   : > { %p188_p2 = pnand %p1267_p0, %p187_p1 }
   0x5   : > { %p215_p3 = scmp.lt.s32.totalorder (!%p188_p2), %s1263_s19, 1  ;;  %s1368_s24 = smov (!%p188_p2), 112  }
   0x6   : > { %191 = sbr.rel (%p188_p2) target bundleno = 533 (0x215), region = 40  ;;  %s1369_s25 = smov (!%p188_p2), 113  }
   0x7   : > { %s1370_s26 = smov (!%p188_p2), 111   ;;  %s1371_s27 = smov (!%p188_p2), 127  }
   0x8   : > { %s1372_s28 = smov (!%p188_p2), 1   ;;  %s1373_s29 = smov (!%p188_p2), 15  }
   0x9   : > { %s1374_s30 = smov (!%p188_p2), 16   ;;  %s1376_s6 = smov (!%p188_p2), 17  }
   0xb   : > { %s1845_s19 = smov (!%p215_p3, %s1263_s19), 1  ;;  %vm253_vm0 = vcmask 1042434   ;;  %vm256_vm1 = vcmask 1043459   ;;  %vm291_vm2 = vcmask 1044484   ;;  %vm250_vm3 = vcmask 1041409  }
   0xc   : > { %s1300_s20 = sshll.u32 %s1845_s19, 6  ;;  %vm336_vm4 = vcmask 1045509   ;;  %vm377_vm5 = vcmask 1046534   ;;  %vm300_vm8 = vcmask 916480   ;;  %vm348_vm9 = vcmask 924672   ;;  %s1301_s8 = sshll.u32 %s1845_s19, 3 }
   0xd   : > { %s1421_s23 = scalar_lea.vmem %s1826_s0, %s1300_s20  ;;  %vm268_vm10 = vcmask 908288   ;;  %vm386_vm15 = vcmask 1039360   ;;  %s224_s11 = scalar_lea.vmem %s1831_s5, %s1301_s8 }
   0xe   : > { %v229_v0 = vld [vmem:[%s1421_s23] sm:$0x11]  ;;  %v230_v1 = vld [vmem:[%s1421_s23 + $0x10] sm:$0x11]  ;;  %v311_v8 = vld [vmem:[%s1421_s23] sm:$0x22] }
   0xf   : > { %v231_v2 = vld [vmem:[%s1421_s23 + $0x20] sm:$0x11]  ;;  %v232_v3 = vld [vmem:[%s1421_s23 + $0x30] sm:$0x11]  ;;  %v233_v4 = vunpack.c.l.bf16 %v229_v0  ;;  %v234_v5 = vunpack.c.h.bf16 %v229_v0  ;;  %v235_v6 = vunpack.c.l.bf16 %v230_v1  ;;  %v236_v7 = vunpack.c.h.bf16 %v230_v1  ;;  %v312_v13 = vld [vmem:[%s1421_s23 + $0x10] sm:$0x22] }
  0x10   : > { %v237_v9 = vunpack.c.l.bf16 %v231_v2  ;;  %v238_v10 = vunpack.c.h.bf16 %v231_v2  ;;  %v239_v11 = vunpack.c.l.bf16 %v232_v3  ;;  %v240_v12 = vunpack.c.h.bf16 %v232_v3  ;;  %v313_v16 = vld [vmem:[%s1421_s23 + $0x20] sm:$0x22]  ;;  %v314_v23 = vld [vmem:[%s1421_s23 + $0x30] sm:$0x22]  ;;  %v1448_v52 = vld [vmem:[%s1421_s23] sm:$0x44] }
  0x11   : > { %v249_v14 = vrot.slane %v235_v6, 7  ;;  %v258_v15 = vrot.slane %v236_v7, 7  ;;  %v315_v17 = vunpack.c.l.bf16 %v311_v8  ;;  %v316_v18 = vunpack.c.h.bf16 %v311_v8  ;;  %v1455_v57 = vld [vmem:[%s1421_s23 + $0x10] sm:$0x44]  ;;  %v1458_v58 = vld [vmem:[%s1421_s23 + $0x20] sm:$0x44] }
  0x12   : > { %v252_v19 = vrot.slane %v237_v9, 6  ;;  %v255_v20 = vrot.slane %v239_v11, 5  ;;  %v260_v21 = vrot.slane %v238_v10, 6  ;;  %v262_v22 = vrot.slane %v240_v12, 5  ;;  %v1463_v63 = vld [vmem:[%s1421_s23 + $0x30] sm:$0x44] }
  0x13   : > { %v289_v24 = vsel %vm253_vm0, %v249_v14, %v233_v4  ;;  %v293_v25 = vsel %vm253_vm0, %v258_v15, %v234_v5  ;;  %v317_v26 = vunpack.c.l.bf16 %v312_v13  ;;  %v318_v27 = vunpack.c.h.bf16 %v312_v13 }
  0x14   : > { %v290_v28 = vsel %vm256_vm1, %v252_v19, %v289_v24  ;;  %v294_v29 = vsel %vm256_vm1, %v260_v21, %v293_v25  ;;  %v319_v30 = vunpack.c.l.bf16 %v313_v16  ;;  %v320_v31 = vunpack.c.h.bf16 %v313_v16 }
  0x15   : > { %v292_v32 = vsel %vm291_vm2, %v255_v20, %v290_v28  ;;  %v295_v33 = vsel %vm291_vm2, %v262_v22, %v294_v29  ;;  %v321_v34 = vunpack.c.l.bf16 %v314_v23  ;;  %v322_v35 = vunpack.c.h.bf16 %v314_v23  ;;  %v469_v23 = vld [vmem:[%s1421_s23 + $0x30] sm:$0x88] }
  0x16   : > { %v1319_v36 = vpack.i.bf16 %v295_v33, %v292_v32  ;;  %v331_v37 = vrot.slane %v317_v26, 7  ;;  %v333_v38 = vrot.slane %v319_v30, 6  ;;  %v338_v39 = vrot.slane %v318_v27, 7 }
  0x17   : > { %v335_v40 = vrot.slane %v321_v34, 5  ;;  %v340_v41 = vrot.slane %v320_v31, 6  ;;  %v342_v42 = vrot.slane %v322_v35, 5  ;;  %v251_v43 = vsel %vm250_vm3, %v249_v14, %v233_v4  ;;  %v466_v14 = vld [vmem:[%s1421_s23] sm:$0x88] }
  0x18   : > { %1320 = vrot.lane.b32.xlu0 %v1319_v36, %s1368_s24  ;;  %v332_v44 = vsel %vm256_vm1, %v331_v37, %v315_v17  ;;  %v339_v45 = vsel %vm256_vm1, %v338_v39, %v316_v18  ;;  %v254_v46 = vsel %vm253_vm0, %v252_v19, %v251_v43  ;;  %v259_v47 = vsel %vm250_vm3, %v258_v15, %v234_v5 }
  0x19   : > { %v334_v48 = vsel %vm291_vm2, %v333_v38, %v332_v44  ;;  %v341_v49 = vsel %vm291_vm2, %v340_v41, %v339_v45  ;;  %v257_v50 = vsel %vm256_vm1, %v255_v20, %v254_v46  ;;  %v261_v51 = vsel %vm253_vm0, %v260_v21, %v259_v47 }
  0x1a   : > { %v337_v53 = vsel %vm336_vm4, %v335_v40, %v334_v48  ;;  %v343_v54 = vsel %vm336_vm4, %v342_v42, %v341_v49  ;;  %v263_v55 = vsel %vm256_vm1, %v262_v22, %v261_v51  ;;  %v375_v56 = vsel %vm291_vm2, %v331_v37, %v315_v17  ;;  %v467_v17 = vld [vmem:[%s1421_s23 + $0x10] sm:$0x88] }
  0x1b   : > { %v1329_v59 = vpack.i.bf16 %v343_v54, %v337_v53  ;;  %v1324_v60 = vpack.i.bf16 %v263_v55, %v257_v50  ;;  %v376_v61 = vsel %vm336_vm4, %v333_v38, %v375_v56  ;;  %v379_v62 = vsel %vm291_vm2, %v338_v39, %v316_v18  ;;  %v468_v18 = vld [vmem:[%s1421_s23 + $0x20] sm:$0x88]  ;;  %v538_v53 = vld [vmem:[%s1421_s23 + $0x8] sm:$0x11] }
  0x1c   : > { %v378_v0 = vsel %vm377_vm5, %v335_v40, %v376_v61  ;;  %v380_v1 = vsel %vm336_vm4, %v340_v41, %v379_v62  ;;  %v405_v2 = vunpack.c.l.bf16 %v1448_v52  ;;  %v406_v3 = vunpack.c.h.bf16 %v1448_v52 }
  0x1d   : > { %1330 = vrot.lane.b32.xlu1 %v1329_v59, %s1369_s25  ;;  %1325 = vrot.lane.b32.xlu0 %v1324_v60, %s1370_s26  ;;  %v381_v4 = vsel %vm377_vm5, %v342_v42, %v380_v1  ;;  %v407_v5 = vunpack.c.l.bf16 %v1455_v57  ;;  %v408_v6 = vunpack.c.h.bf16 %v1455_v57  ;;  %v409_v7 = vunpack.c.l.bf16 %v1458_v58  ;;  %v539_v1 = vld [vmem:[%s1421_s23 + $0x18] sm:$0x11] }
  0x1e   : > { %v1334_v8 = vpack.i.bf16 %v381_v4, %v378_v0  ;;  %v410_v9 = vunpack.c.h.bf16 %v1458_v58  ;;  %v411_v10 = vunpack.c.l.bf16 %v1463_v63  ;;  %v412_v11 = vunpack.c.h.bf16 %v1463_v63  ;;  %v540_v4 = vld [vmem:[%s1421_s23 + $0x28] sm:$0x11] }
  0x1f   : > { %v439_v12 = vrot.slane %v405_v2, 5  ;;  %v440_v13 = vrot.slane %v407_v5, 4  ;;  %v442_v15 = vrot.slane %v409_v7, 3  ;;  %v446_v20 = vrot.slane %v406_v3, 5 }
  0x20   : > { %v444_v16 = vrot.slane %v411_v10, 2  ;;  %v447_v21 = vrot.slane %v408_v6, 4  ;;  %v449_v22 = vrot.slane %v410_v9, 3  ;;  %v451_v25 = vrot.slane %v412_v11, 2 }
  0x21   : > { %1335 = vrot.lane.b32.xlu1 %v1334_v8, %s1371_s27  ;;  %v441_v19 = vsel %vm250_vm3, %v440_v13, %v439_v12  ;;  %v470_v26 = vunpack.c.l.bf16 %v466_v14  ;;  %v471_v27 = vunpack.c.h.bf16 %v466_v14  ;;  %v472_v30 = vunpack.c.l.bf16 %v467_v17  ;;  %v541_v14 = vld [vmem:[%s1421_s23 + $0x38] sm:$0x11] }
  0x22   : > { %v443_v24 = vsel %vm253_vm0, %v442_v15, %v441_v19  ;;  %v448_v29 = vsel %vm250_vm3, %v447_v21, %v446_v20  ;;  %v473_v31 = vunpack.c.h.bf16 %v467_v17  ;;  %v474_v33 = vunpack.c.l.bf16 %v468_v18 }
  0x23   : > { %v445_v28 = vsel %vm256_vm1, %v444_v16, %v443_v24  ;;  %v450_v32 = vsel %vm253_vm0, %v449_v22, %v448_v29  ;;  %v475_v34 = vunpack.c.h.bf16 %v468_v18  ;;  %v476_v35 = vunpack.c.l.bf16 %v469_v23 }
  0x24   : > { %v452_v36 = vsel %vm256_vm1, %v451_v25, %v450_v32  ;;  %v477_v37 = vunpack.c.h.bf16 %v469_v23  ;;  %v486_v38 = vrot.slane %v470_v26, 6  ;;  %v487_v39 = vrot.slane %v472_v30, 5 }
  0x25   : > { %v1339_v40 = vpack.i.bf16 %v452_v36, %v445_v28  ;;  %v489_v41 = vrot.slane %v474_v33, 4  ;;  %v491_v42 = vrot.slane %v476_v35, 3  ;;  %v493_v43 = vrot.slane %v471_v27, 6 }
  0x26   : > { %v488_v44 = vsel %vm250_vm3, %v487_v39, %v486_v38  ;;  %v494_v45 = vrot.slane %v473_v31, 5  ;;  %v496_v46 = vrot.slane %v475_v34, 4  ;;  %v498_v47 = vrot.slane %v477_v37, 3 }
  0x27   : > { %1340 = vrot.lane.b32.xlu0 %v1339_v40, %s1372_s28  ;;  %v490_v48 = vsel %vm253_vm0, %v489_v41, %v488_v44  ;;  %v513_v49 = vrot.slane %v470_v26, 7  ;;  %v514_v50 = vrot.slane %v472_v30, 6  ;;  %v516_v51 = vrot.slane %v474_v33, 5 }
  0x28   : > { %v492_v54 = vsel %vm256_vm1, %v491_v42, %v490_v48  ;;  %v495_v55 = vsel %vm250_vm3, %v494_v45, %v493_v43  ;;  %v518_v56 = vrot.slane %v476_v35, 4  ;;  %v520_v59 = vrot.slane %v471_v27, 7 }
  0x29   : > { %v497_v60 = vsel %vm253_vm0, %v496_v46, %v495_v55  ;;  %v515_v61 = vsel %vm250_vm3, %v514_v50, %v513_v49  ;;  %v521_v62 = vrot.slane %v473_v31, 6  ;;  %v523_v0 = vrot.slane %v475_v34, 5 }
  0x2a   : > { %v499_v8 = vsel %vm256_vm1, %v498_v47, %v497_v60  ;;  %v517_v12 = vsel %vm253_vm0, %v516_v51, %v515_v61  ;;  %v525_v13 = vrot.slane %v477_v37, 4  ;;  %v542_v15 = vunpack.c.l.bf16 %v538_v53 }
  0x2b   : > { %v1344_v16 = vpack.i.bf16 %v499_v8, %v492_v54  ;;  %v519_v17 = vsel %vm256_vm1, %v518_v56, %v517_v12  ;;  %v522_v18 = vsel %vm250_vm3, %v521_v62, %v520_v59  ;;  %v543_v19 = vunpack.c.h.bf16 %v538_v53 }
  0x2c   : > { %v524_v20 = vsel %vm253_vm0, %v523_v0, %v522_v18  ;;  %v544_v21 = vunpack.c.l.bf16 %v539_v1  ;;  %v545_v22 = vunpack.c.h.bf16 %v539_v1  ;;  %v546_v23 = vunpack.c.l.bf16 %v540_v4 }
  0x2d   : > { %1345 = vrot.lane.b32.xlu1 %v1344_v16, %s1373_s29  ;;  %v526_v24 = vsel %vm256_vm1, %v525_v13, %v524_v20  ;;  %v547_v25 = vunpack.c.h.bf16 %v540_v4  ;;  %v548_v26 = vunpack.c.l.bf16 %v541_v14  ;;  %v549_v27 = vunpack.c.h.bf16 %v541_v14 }
  0x2e   : > { %v1349_v28 = vpack.i.bf16 %v526_v24, %v519_v17  ;;  %v558_v29 = vrot.slane %v544_v21, 7  ;;  %v560_v30 = vrot.slane %v546_v23, 6  ;;  %v564_v31 = vrot.slane %v545_v22, 7 }
  0x2f   : > { %v562_v32 = vrot.slane %v548_v26, 5  ;;  %v566_v33 = vrot.slane %v547_v25, 6  ;;  %v568_v34 = vrot.slane %v549_v27, 5  ;;  %v428_v35 = vrot.slane %v406_v3, 4 }
  0x30   : > { %v429_v36 = vrot.slane %v408_v6, 3  ;;  %1350 = vrot.lane.b32.xlu0 %v1349_v28, %s1374_s30  ;;  %v559_v37 = vsel %vm250_vm3, %v558_v29, %v542_v15  ;;  %v565_v38 = vsel %vm250_vm3, %v564_v31, %v543_v19  ;;  %v1375_v39 = vmov 0  }
  0x31   : > { %679 = vmatprep.mubr.bf16.mxu0 %v1375_v39  ;;  %v431_v40 = vrot.slane %v410_v9, 2  ;;  %v561_v41 = vsel %vm253_vm0, %v560_v30, %v559_v37  ;;  %v567_v3 = vsel %vm253_vm0, %v566_v33, %v565_v38  ;;  %729 = vmatprep.mubr.bf16.mxu1 %v1375_v39  ;;  %v433_v6 = vrot.slane %v412_v11, 1 }
  0x32   : > { %1359 = vset.pattern.permute.xlu0 %v1375_v39  ;;  %v563_v42 = vsel %vm256_vm1, %v562_v32, %v561_v41  ;;  %v569_v43 = vsel %vm256_vm1, %v568_v34, %v567_v3  ;;  %v430_v45 = vsel %vm250_vm3, %v429_v36, %v428_v35  ;;  %v421_v46 = vrot.slane %v405_v2, 4  ;;  %v228_v2 = vld [vmem:[%s1828_s2] sm:$0x3] }
  0x33   : > { %v1354_v44 = vpack.i.bf16 %v569_v43, %v563_v42  ;;  %v432_v9 = vsel %vm253_vm0, %v431_v40, %v430_v45  ;;  %v422_v11 = vrot.slane %v407_v5, 3  ;;  %v424_v48 = vrot.slane %v409_v7, 2 }
  0x34   : > { %v1547_v47 = vsel %vm256_vm1, %v433_v6, %v432_v9  ;;  %v426_v49 = vrot.slane %v411_v10, 1  ;;  %v275_v52 = vlaneseq  ;;  %vm353_vm6 = vcmp.ge.s32.totalorder %v228_v2, 1 }
  0x35   : > { %1355 = vrot.lane.b32.xlu1 %v1354_v44, %s1376_s6  ;;  %v423_v50 = vsel %vm250_vm3, %v422_v11, %v421_v46  ;;  %vm273_vm7 = vcmp.lt.s32.totalorder %v228_v2, 15  ;;  %v354_v5 = vsel %vm353_vm6, 1, %v1375_v39  ;;  %vm531_vm2 = vcmask 130048  }
  0x36   : > { %v425_v51 = vsel %vm253_vm0, %v424_v48, %v423_v50  ;;  %v1563_v57 = vshrl.u32 %v275_v52, 7  ;;  %v274_v7 = vsel %vm273_vm7, 1, %v1375_v39  ;;  %vm457_vm0 = vcmask 7168  }
  0x37   : > { %v1558_v53 = vsel %vm256_vm1, %v426_v49, %v425_v51  ;;  %vm504_vm1 = vcmask 121856   ;;  %vm574_vm4 = vcmask 138240   ;;  %vm641_vm6 = vcmask 1041408  }
  0x38   : > { %v1566_v58 = vsub.s32 0, %v1563_v57  ;;  %v1569_v63 = vsub.s32 1, %v1563_v57  ;;  %vm637_vm7 = vcmask 31744  }
  0x3a   : > { %v358_v54 = vrot.slane %v354_v5, %v1566_v58  ;;  %v362_v55 = vrot.slane %v354_v5, %v1569_v63  ;;  %v278_v60 = vrot.slane %v274_v7, %v1566_v58  ;;  %v282_v61 = vrot.slane %v274_v7, %v1569_v63 }
  0x3c   : > { %vm1579_vm11 = vcmp.eq.s32.totalorder %v358_v54, 1  ;;  %vm1583_vm12 = vcmp.eq.s32.totalorder %v362_v55, 1  ;;  %vm1587_vm13 = vcmp.eq.s32.totalorder %v278_v60, 1  ;;  %vm1591_vm14 = vcmp.eq.s32.totalorder %v282_v61, 1 }
  0x3d   : > { %vm612_vm3 = vmpackc.low %vm1583_vm12, %vm1579_vm11 }
  0x3e   : > { %vm748_vm5 = vmpackc.low %vm1591_vm14, %vm1587_vm13 }
  0x8a   : > { %v1321_v10 = vpop.permute.xlu0 %1320 }
  0x8b   : > { %v1323_v56 = vunpack.i.h.bf16 %v1321_v10  ;;  %v1322_v59 = vunpack.i.l.bf16 %v1321_v10 }
  0x8d   : > { %v303_v62 = vsel %vm300_vm8, %v1323_v56, 0.0  ;;  %v301_v0 = vsel %vm300_vm8, %v1322_v59, %v1323_v56 }
  0x8e   : > { %v306_v19 = vrot.slane %v303_v62, 1  ;;  %v305_v20 = vrot.slane %v301_v0, 1 }
  0x8f   : > { %v1331_v8 = vpop.permute.xlu1 %1330  ;;  %v1326_v14 = vpop.permute.xlu0 %1325 }
  0x90   : > { %v1333_v15 = vunpack.i.h.bf16 %v1331_v8  ;;  %v1332_v16 = vunpack.i.l.bf16 %v1331_v8  ;;  %v1328_v17 = vunpack.i.h.bf16 %v1326_v14  ;;  %v1327_v18 = vunpack.i.l.bf16 %v1326_v14 }
  0x92   : > { %v352_v21 = vsel %vm348_vm9, %v1333_v15, 0.0  ;;  %v349_v22 = vsel %vm348_vm9, %v1332_v16, %v1333_v15  ;;  %v272_v23 = vsel %vm268_vm10, %v1328_v17, 0.0  ;;  %v269_v24 = vsel %vm268_vm10, %v1327_v18, %v1328_v17  ;;  %v583_v15 = vld [vmem:[%s1827_s1] sm:$0x3] }
  0x93   : > { %v366_v25 = vsel %vm1583_vm12, %v352_v21, 0.0  ;;  %v365_v26 = vsel %vm1579_vm11, %v349_v22, 0.0  ;;  %v286_v27 = vsel %vm1591_vm14, %v272_v23, 0.0  ;;  %v285_v28 = vsel %vm1587_vm13, %v269_v24, 0.0  ;;  %v1336_v29 = vpop.permute.xlu1 %1335 }
  0x94   : > { %v310_v30 = vadd.f32 %v306_v19, %v286_v27  ;;  %v309_v31 = vadd.f32 %v305_v20, %v285_v28  ;;  %v370_v32 = vrot.slane %v366_v25, 2  ;;  %v369_v33 = vrot.slane %v365_v26, 2 }
  0x95   : > { %v1338_v34 = vunpack.i.h.bf16 %v1336_v29  ;;  %v1337_v35 = vunpack.i.l.bf16 %v1336_v29  ;;  %v588_v21 = vrot.slane %v583_v15, %v1566_v58  ;;  %v592_v22 = vrot.slane %v583_v15, %v1569_v63  ;;  %v1195_v63 = vld [vmem:[%s1830_s4] sm:$0xf] }
  0x96   : > { %v374_v36 = vadd.f32 %v370_v32, %v310_v30  ;;  %v373_v37 = vadd.f32 %v369_v33, %v309_v31  ;;  %v620_v33 = vsub.s32 4, %v1563_v57  ;;  %v749_v57 = vsel %vm748_vm5, 65537, %v1375_v39 }
  0x97   : > { %v390_v38 = vsel %vm386_vm15, %v1338_v34, 0.0  ;;  %v387_v40 = vsel %vm386_vm15, %v1337_v35, %v1338_v34  ;;  %v613_v34 = vsel %vm612_vm3, 65537, %v1375_v39  ;;  %v753_v13 = vrot.slane %v749_v57, %v1566_v58 }
  0x98   : > { %v392_v41 = vsel %vm1591_vm14, %v390_v38, 0.0  ;;  %v391_v3 = vsel %vm1587_vm13, %v387_v40, 0.0  ;;  %v1694_v35 = vrot.slane %v613_v34, %v620_v33 }
  0x99   : > { %v396_v6 = vrot.slane %v392_v41, 3  ;;  %v395_v42 = vrot.slane %v391_v3, 3  ;;  %v1341_v43 = vpop.permute.xlu0 %1340  ;;  %v1272_v41 = vld [vmem:[%s1829_s3 + $0x2] sm:$0x3]  ;;  %v1716_v3 = vrot.slane %v749_v57, %v620_v33  ;;  %v1289_v33 = vld [vmem:[%s1829_s3 + $0xc] sm:$0x3] }
  0x9a   : > { %v1343_v9 = vunpack.i.h.bf16 %v1341_v43  ;;  %v1342_v46 = vunpack.i.l.bf16 %v1341_v43  ;;  %v1292_v57 = vld [vmem:[%s1829_s3 + $0xe] sm:$0x3] }
  0x9b   : > { %v399_v44 = vadd.f32 %v395_v42, %v373_v37  ;;  %v400_v45 = vadd.f32 %v396_v6, %v374_v36  ;;  %v617_v36 = vrot.slane %v613_v34, %v1566_v58 }
  0x9c   : > { %v458_v49 = vsel %vm457_vm0, %v1342_v46, %v1343_v9  ;;  %v461_v50 = vsel %vm457_vm0, 0.0, %v1342_v46 }
  0x9d   : > { %v438_v11 = vadd.f32 %v1547_v47, %v400_v45  ;;  %v437_v48 = vadd.f32 %v1558_v53, %v399_v44  ;;  %v462_v51 = vsel %vm1579_vm11, %v461_v50, 0.0  ;;  %v463_v52 = vsel %vm1583_vm12, %v458_v49, 0.0  ;;  %v626_v49 = vld [vmem:[%s1829_s3] sm:$0x3] }
  0x9f   : > { %v1346_v2 = vpop.permute.xlu1 %1345  ;;  %v464_v5 = vadd.f32 %v462_v51, %v437_v48  ;;  %v465_v7 = vadd.f32 %v463_v52, %v438_v11 }
  0xa0   : > { %v1348_v10 = vunpack.i.h.bf16 %v1346_v2  ;;  %v1347_v54 = vunpack.i.l.bf16 %v1346_v2 }
  0xa2   : > { %v505_v47 = vsel %vm504_vm1, %v1347_v54, %v1348_v10  ;;  %v508_v53 = vsel %vm504_vm1, 0.0, %v1347_v54  ;;  %v1351_v55 = vpop.permute.xlu0 %1350  ;;  %v1277_v54 = vld [vmem:[%s1829_s3 + $0x4] sm:$0x3] }
  0xa3   : > { %v509_v56 = vsel %vm1587_vm13, %v508_v53, 0.0  ;;  %v510_v59 = vsel %vm1591_vm14, %v505_v47, 0.0  ;;  %v1353_v60 = vunpack.i.h.bf16 %v1351_v55  ;;  %v1352_v61 = vunpack.i.l.bf16 %v1351_v55 }
  0xa4   : > { %v511_v62 = vadd.f32 %v509_v56, %v464_v5  ;;  %v512_v0 = vadd.f32 %v510_v59, %v465_v7  ;;  %vm1727_vm13 = vcmp.ne.s16.totalorder %v753_v13, 0  ;;  %vm759_vm14 = vcmp.ne.s16.totalorder %v1716_v3, 0 }
  0xa5   : > { %v532_v8 = vsel %vm531_vm2, %v1352_v61, %v1353_v60  ;;  %v535_v14 = vsel %vm531_vm2, 0.0, %v1352_v61 }
  0xa6   : > { %v536_v17 = vadd.f32 %v535_v14, %v511_v62  ;;  %v537_v18 = vadd.f32 %v532_v8, %v512_v0  ;;  %v1280_v0 = vld [vmem:[%s1829_s3 + $0x6] sm:$0x3] }
  0xa7   : > { %v1356_v16 = vpop.permute.xlu1 %1355 }
  0xa8   : > { %v1358_v19 = vunpack.i.h.bf16 %v1356_v16  ;;  %v1357_v20 = vunpack.i.l.bf16 %v1356_v16 }
  0xaa   : > { %v575_v23 = vsel %vm574_vm4, %v1357_v20, %v1358_v19  ;;  %v578_v24 = vsel %vm574_vm4, 0.0, %v1357_v20  ;;  %v1283_v20 = vld [vmem:[%s1829_s3 + $0x8] sm:$0x3] }
  0xab   : > { %v579_v25 = vsel %vm1579_vm11, %v578_v24, 0.0  ;;  %v580_v26 = vsel %vm1583_vm12, %v575_v23, 0.0  ;;  %vm623_vm11 = vcmp.ne.s16.totalorder %v1694_v35, 0  ;;  %vm1711_vm12 = vcmp.ne.s16.totalorder %v617_v36, 0 }
  0xac   : > { %v581_v27 = vadd.f32 %v579_v25, %v536_v17  ;;  %v582_v28 = vadd.f32 %v580_v26, %v537_v18 }
  0xae   : > { %v595_v29 = vmul.f32 %v588_v21, %v581_v27  ;;  %v596_v30 = vmul.f32 %v592_v22, %v582_v28  ;;  %v1286_v28 = vld [vmem:[%s1829_s3 + $0xa] sm:$0x3] }
  0xb0   : > { %v1648_v31 = vpack.c.bf16 %v595_v29, %v595_v29  ;;  %v1650_v32 = vpack.c.bf16 %v596_v30, %v596_v30 }
  0xb2   : > { %629 = vrot.lane.b32.xlu1 %v1650_v32, %s1374_s30  ;;  %627 = vrot.lane.b32.xlu0 %v1648_v31, %s1374_s30  ;;  %v888_v60 = vsel %vm641_vm6, %v1648_v31, 0 }
  0xb6   : > { %603 = vrot.lane.b32.xlu1 %v1650_v32, %s1376_s6  ;;  %601 = vrot.lane.b32.xlu0 %v1648_v31, %s1376_s6 }
  0xba   : > { %740 = vrot.lane.b32.xlu1 %v1650_v32, %s1373_s29  ;;  %738 = vrot.lane.b32.xlu0 %v1648_v31, %s1373_s29 }
  0xbe   : > { %818 = vrot.lane.b32.xlu1 %v1650_v32, %s1372_s28  ;;  %816 = vrot.lane.b32.xlu0 %v1648_v31, %s1372_s28 }
  0xc2   : > { %938 = vrot.lane.b32.xlu1 %v1650_v32, %s1371_s27  ;;  %936 = vrot.lane.b32.xlu0 %v1648_v31, %s1371_s27 }
  0xc6   : > { %1004 = vrot.lane.b32.xlu1 %v1650_v32, %s1369_s25  ;;  %1002 = vrot.lane.b32.xlu0 %v1648_v31, %s1369_s25 }
  0xca   : > { %1070 = vrot.lane.b32.xlu1 %v1650_v32, %s1368_s24  ;;  %1068 = vrot.lane.b32.xlu0 %v1648_v31, %s1368_s24 }
  0xce   : > { %1131 = vrot.lane.b32.xlu1 %v1650_v32, %s1370_s26  ;;  %1129 = vrot.lane.b32.xlu0 %v1648_v31, %s1370_s26 }
  0xd2   : > { %1198 = vperm.xlu0 %1359, %v1195_v63  }
 0x124   : > { %v630_v37 = vpop.permute.xlu1 %629  ;;  %v628_v38 = vpop.permute.xlu0 %627 }
 0x125   : > { %v632_v40 = vsel %vm531_vm2, %v628_v38, %v630_v37  ;;  %v634_v1 = vsel %vm531_vm2, 0, %v628_v38 }
 0x126   : > { %1273 = vmatprep.subr.msk.bf16.mxu0 %vm641_vm6, %v632_v40  ;;  %v642_v4 = vsel %vm641_vm6, %v634_v1, 0  ;;  %v1295_v40 = vld [vmem:[%s1829_s3 + $0x10] sm:$0x3] }
 0x127   : > { %662 = vmatpush1.bf16.msra.mxu0 %v642_v4 }
 0x128   : > { %v604_v6 = vpop.permute.xlu1 %603  ;;  %v602_v42 = vpop.permute.xlu0 %601 }
 0x129   : > { %v610_v43 = vsel %vm574_vm4, 0, %v602_v42  ;;  %v606_v44 = vsel %vm574_vm4, %v602_v42, %v604_v6 }
 0x12a   : > { %1274 = vmatmul.mubr.msk.bf16.vlgmr.msra.gmra.mxu0 %vm637_vm7, %v1272_v41  ;;  %v625_v45 = vsel %vm623_vm11, %v606_v44, 0  ;;  %v624_v9 = vsel %vm1711_vm12, %v610_v43, 0 }
 0x12b   : > { %1275 = vmatprep.subr.msk.bf16.mxu1 %vm641_vm6, %v625_v45  ;;  %v692_v58 = vsel %vm641_vm6, %v624_v9, 0  ;;  %805 = vmatprep.mubr.bf16.mxu0 %v1375_v39 }
 0x12c   : > { %v741_v11 = vpop.permute.xlu1 %740  ;;  %712 = vmatpush1.bf16.msra.mxu1 %v692_v58  ;;  %v739_v48 = vpop.permute.xlu0 %738 }
 0x12d   : > { %v743_v50 = vsel %vm504_vm1, %v739_v48, %v741_v11  ;;  %v746_v51 = vsel %vm504_vm1, 0, %v739_v48 }
 0x12e   : > { %v760_v52 = vsel %vm1727_vm13, %v746_v51, 0  ;;  %v761_v2 = vsel %vm759_vm14, %v743_v50, 0 }
 0x12f   : > { %1276 = vmatmul.mubr.msk.bf16.vlgmr.msra.gmra.mxu1 %vm637_vm7, %v626_v49  ;;  %1278 = vmatprep.subr.msk.bf16.mxu0 %vm641_vm6, %v761_v2  ;;  %v768_v5 = vsel %vm641_vm6, %v760_v52, 0 }
 0x130   : > { %v819_v7 = vpop.permute.xlu1 %818  ;;  %788 = vmatpush1.bf16.msra.mxu0 %v768_v5  ;;  %v817_v10 = vpop.permute.xlu0 %816  ;;  %871 = vmatprep.mubr.bf16.mxu1 %v1375_v39 }
 0x131   : > { %v821_v47 = vsel %vm457_vm0, %v817_v10, %v819_v7  ;;  %v824_v53 = vsel %vm457_vm0, 0, %v817_v10  ;;  %1284 = vmatprep.subr.msk.bf16.mxu0 %vm641_vm6, %v1650_v32 }
 0x132   : > { %v826_v55 = vsel %vm1711_vm12, %v824_v53, 0  ;;  %v827_v56 = vsel %vm623_vm11, %v821_v47, 0 }
 0x133   : > { %1279 = vmatmul.mubr.msk.bf16.vlgmr.msra.gmra.mxu0 %vm637_vm7, %v1277_v54  ;;  %1281 = vmatprep.subr.msk.bf16.mxu1 %vm641_vm6, %v827_v56  ;;  %v834_v59 = vsel %vm641_vm6, %v826_v55, 0 }
 0x134   : > { %v939_v61 = vpop.permute.xlu1 %938  ;;  %854 = vmatpush1.bf16.msra.mxu1 %v834_v59  ;;  %v937_v62 = vpop.permute.xlu0 %936  ;;  %908 = vmatpush1.bf16.msra.mxu0 %v888_v60 }
 0x135   : > { %v944_v8 = vsel %vm386_vm15, %v939_v61, 0  ;;  %v941_v14 = vsel %vm386_vm15, %v937_v62, %v939_v61  ;;  %925 = vmatprep.mubr.bf16.mxu0 %v1375_v39 }
 0x136   : > { %v947_v15 = vsel %vm759_vm14, %v944_v8, 0  ;;  %v946_v16 = vsel %vm1727_vm13, %v941_v14, 0 }
 0x137   : > { %1282 = vmatmul.mubr.msk.bf16.vlgmr.msra.gmra.mxu1 %vm637_vm7, %v1280_v0  ;;  %1287 = vmatprep.subr.msk.bf16.mxu1 %vm641_vm6, %v947_v15  ;;  %v954_v17 = vsel %vm641_vm6, %v946_v16, 0 }
 0x138   : > { %v1005_v18 = vpop.permute.xlu1 %1004  ;;  %974 = vmatpush1.bf16.msra.mxu1 %v954_v17  ;;  %v1003_v19 = vpop.permute.xlu0 %1002  ;;  %991 = vmatprep.mubr.bf16.mxu1 %v1375_v39 }
 0x139   : > { %v1010_v21 = vsel %vm348_vm9, %v1005_v18, 0  ;;  %v1007_v22 = vsel %vm348_vm9, %v1003_v19, %v1005_v18 }
 0x13a   : > { %v1013_v23 = vsel %vm623_vm11, %v1010_v21, 0  ;;  %v1012_v24 = vsel %vm1711_vm12, %v1007_v22, 0 }
 0x13b   : > { %1285 = vmatmul.mubr.msk.bf16.vlgmr.msra.gmra.mxu0 %vm637_vm7, %v1283_v20  ;;  %1290 = vmatprep.subr.msk.bf16.mxu0 %vm641_vm6, %v1013_v23  ;;  %v1020_v25 = vsel %vm641_vm6, %v1012_v24, 0 }
 0x13c   : > { %v1071_v26 = vpop.permute.xlu1 %1070  ;;  %v1069_v27 = vpop.permute.xlu0 %1068  ;;  %1040 = vmatpush1.bf16.msra.mxu0 %v1020_v25  ;;  %1057 = vmatprep.mubr.bf16.mxu0 %v1375_v39 }
 0x13d   : > { %v1075_v29 = vsel %vm300_vm8, %v1071_v26, 0  ;;  %v1073_v30 = vsel %vm300_vm8, %v1069_v27, %v1071_v26 }
 0x13e   : > { %v1082_v31 = vsel %vm641_vm6, %v1073_v30, 0  ;;  %1293 = vmatprep.subr.msk.bf16.mxu1 %vm641_vm6, %v1075_v29 }
 0x13f   : > { %1288 = vmatmul.mubr.msk.bf16.vlgmr.msra.gmra.mxu1 %vm637_vm7, %v1286_v28 }
 0x140   : > { %1101 = vmatpush1.bf16.msra.mxu1 %v1082_v31  ;;  %v1132_v32 = vpop.permute.xlu1 %1131  ;;  %v1130_v63 = vpop.permute.xlu0 %1129  ;;  %1118 = vmatprep.mubr.bf16.mxu1 %v1375_v39 }
 0x141   : > { %v1137_v34 = vsel %vm268_vm10, %v1132_v32, 0  ;;  %v1134_v35 = vsel %vm268_vm10, %v1130_v63, %v1132_v32 }
 0x142   : > { %v1140_v36 = vsel %vm759_vm14, %v1137_v34, 0  ;;  %v1139_v37 = vsel %vm1727_vm13, %v1134_v35, 0 }
 0x143   : > { %1291 = vmatmul.mubr.msk.bf16.vlgmr.msra.gmra.mxu0 %vm637_vm7, %v1289_v33  ;;  %1296 = vmatprep.subr.msk.bf16.mxu0 %vm641_vm6, %v1140_v36  ;;  %v1147_v38 = vsel %vm641_vm6, %v1139_v37, 0 }
 0x144   : > { %1167 = vmatpush1.bf16.msra.mxu0 %v1147_v38  ;;  %1184 = vmatprep.mubr.bf16.mxu0 %v1375_v39 }
 0x147   : > { %1294 = vmatmul.mubr.msk.bf16.vlgmr.msra.gmra.mxu1 %vm637_vm7, %v1292_v57 }
 0x14b   : > { %1297 = vmatmul.mubr.msk.bf16.vlgmr.msra.gmra.mxu0 %vm637_vm7, %v1295_v40 }
 0x14d   : > { %v1199_v25 = vpop.permute.xlu0 %1198 }
 0x1ea   : > { %v681_v1 = vpop.f32.mrf.mxu0 }
 0x1ec   : > { %v683_v4 = vpop.f32.mrf.mxu0 }
 0x1ee   : > { %v685_v41 = vpop.f32.mrf.mxu0 }
 0x1ef   : > { %v731_v12 = vpop.f32.mrf.mxu1 }
 0x1f0   : > { %v686_v13 = vpop.f32.mrf.mxu0  ;;  %v732_v50 = vadd.f32 %v731_v12, %v681_v1 }
 0x1f1   : > { %v733_v3 = vpop.f32.mrf.mxu1 }
 0x1f2   : > { %v734_v2 = vadd.f32 %v733_v3, %v683_v4 }
 0x1f3   : > { %v735_v6 = vpop.f32.mrf.mxu1  ;;  %v807_v42 = vpop.f32.mrf.mxu0 }
 0x1f4   : > { %v814_v5 = vadd.f32 %v807_v42, %v732_v50 }
 0x1f5   : > { %v736_v43 = vpop.f32.mrf.mxu1  ;;  %v809_v44 = vpop.f32.mrf.mxu0 }
 0x1f6   : > { %v815_v54 = vadd.f32 %v809_v44, %v734_v2 }
 0x1f7   : > { %v811_v45 = vpop.f32.mrf.mxu0  ;;  %v873_v39 = vpop.f32.mrf.mxu1 }
 0x1f8   : > { %v880_v47 = vadd.f32 %v873_v39, %v814_v5 }
 0x1f9   : > { %v812_v9 = vpop.f32.mrf.mxu0  ;;  %v875_v58 = vpop.f32.mrf.mxu1 }
 0x1fa   : > { %v881_v56 = vadd.f32 %v875_v58, %v815_v54 }
 0x1fb   : > { %v877_v46 = vpop.f32.mrf.mxu1  ;;  %v927_v11 = vpop.f32.mrf.mxu0 }
 0x1fc   : > { %v934_v59 = vadd.f32 %v927_v11, %v880_v47 }
 0x1fd   : > { %v878_v48 = vpop.f32.mrf.mxu1  ;;  %v929_v49 = vpop.f32.mrf.mxu0 }
 0x1fe   : > { %v935_v62 = vadd.f32 %v929_v49, %v881_v56 }
 0x1ff   : > { %v931_v51 = vpop.f32.mrf.mxu0  ;;  %v993_v52 = vpop.f32.mrf.mxu1 }
 0x200   : > { %v1000_v0 = vadd.f32 %v993_v52, %v934_v59 }
 0x201   : > { %v932_v7 = vpop.f32.mrf.mxu0  ;;  %v995_v10 = vpop.f32.mrf.mxu1 }
 0x202   : > { %v1001_v15 = vadd.f32 %v995_v10, %v935_v62 }
 0x203   : > { %v997_v53 = vpop.f32.mrf.mxu1  ;;  %v1059_v55 = vpop.f32.mrf.mxu0 }
 0x204   : > { %v1066_v16 = vadd.f32 %v1059_v55, %v1000_v0 }
 0x205   : > { %v998_v60 = vpop.f32.mrf.mxu1  ;;  %v1061_v61 = vpop.f32.mrf.mxu0 }
 0x206   : > { %v1067_v19 = vadd.f32 %v1061_v61, %v1001_v15 }
 0x207   : > { %v1063_v8 = vpop.f32.mrf.mxu0  ;;  %v1120_v14 = vpop.f32.mrf.mxu1 }
 0x208   : > { %v1127_v20 = vadd.f32 %v1120_v14, %v1066_v16 }
 0x209   : > { %v1064_v17 = vpop.f32.mrf.mxu0  ;;  %v1122_v18 = vpop.f32.mrf.mxu1 }
 0x20a   : > { %v1128_v23 = vadd.f32 %v1122_v18, %v1067_v19 }
 0x20b   : > { %v1186_v21 = vpop.f32.mrf.mxu0  ;;  %v1124_v22 = vpop.f32.mrf.mxu1 }
 0x20c   : > { %v1193_v24 = vadd.f32 %v1186_v21, %v1127_v20 }
 0x20d   : > { %v1188_v26 = vpop.f32.mrf.mxu0  ;;  %v1125_v27 = vpop.f32.mrf.mxu1 }
 0x20e   : > { %v1194_v28 = vadd.f32 %v1188_v26, %v1128_v23  ;;  %v1201_v30 = vadd.f32 %v1199_v25, %v1193_v24 }
 0x20f   : > { %v1190_v29 = vpop.f32.mrf.mxu0 }
 0x210   : > { %v1202_v31 = vadd.f32 %v1199_v25, %v1194_v28 }
 0x211   : > { %v1191_v32 = vpop.f32.mrf.mxu0 }
 0x212   : > { %v1205_v63 = vcombine.low %v1201_v30, %v1202_v31 }
 0x214   : > { %1207 = vst [vmem:[%s224_s11] sm:$0xff] %v1205_v63 }
 0x215 PF: > { %s15_s18 = sadd.s32 1, %s1366_s18  }
 0x216   : > { %p12_p4 = scmp.ge.s32.totalorder %s15_s18, 4  }
 0x218   :  { %14 = sbr.rel (!%p12_p4) target bundleno = 1 (0x1), region = 78 }

</bundles_post_ra>
